<compile_context>
chip_gen: v6e
topology: v6e:2x2x1
jax: 0.10.0
libtpu: 0.0.40
codegen_flags: <defaults>
</compile_context>

<pallas_src>
import functools
import math

import jax
import jax.numpy as jnp
import numpy as np
from jax.experimental import pallas as pl
from jax.experimental.pallas import tpu as pltpu


def _repvit_token_mixer_kernel(x_ref, wdw_ref, bnb_ref, mask_ref,
                               w1_ref, b1_ref, w2_ref, b2_ref,
                               seg_ref, segt_ref, out_ref,
                               *, nb, c, img_w, p, n_rows, tail):
    # Block shapes (one batch-block of `nb` images per grid step, R = nb*c):
    #   x_ref    : (R, P)    rows = (image, channel), lanes = flattened H*W
    #   wdw_ref  : (R, 9)    depthwise 3x3 weights (BN scale folded), col = kh*3+kw
    #   bnb_ref  : (R, 1)    folded BatchNorm bias
    #   mask_ref : (9, P)    0/1 boundary-validity masks per tap
    #   w1_ref   : (R, C4)   SE squeeze weight, transposed + tiled per image
    #   b1_ref   : (1, C4)   SE squeeze bias
    #   w2_ref   : (R, C4)   SE excite weight (PyTorch layout), tiled per image
    #   b2_ref   : (R, 1)    SE excite bias, tiled per image
    #   seg_ref  : (nb, R)   0/1 row -> image segment matrix
    #   segt_ref : (R, nb)   its transpose (image -> row broadcast)
    #   out_ref  : (R, P)
    r = nb * c
    x = x_ref[...]                                      # (R, P) float32

    # ---- depthwise 3x3 conv, stride 1, zero padding 1 (taps = lane rolls + masks) ----
    wdw = wdw_ref[...]                                  # (R, 9)  hoisted load
    msk = mask_ref[...]                                 # (9, P)  hoisted load
    acc = x * wdw[:, 4:5]                               # centre tap: no roll, no mask
    for kh in range(3):
        for kw in range(3):
            t = kh * 3 + kw
            if t == 4:
                continue
            d = (kh - 1) * img_w + (kw - 1)             # flattened tap offset
            shifted = pltpu.roll(x, (-d) % p, axis=1)
            acc = acc + (shifted * msk[t:t + 1, :]) * wdw[:, t:t + 1]

    y = acc + bnb_ref[...]                              # folded BatchNorm bias
    y = y * jax.nn.sigmoid(y)                           # SiLU

    # ---- SE: GAP -> 1x1 -> SiLU -> 1x1 -> Sigmoid, vectorised over the nb images ----
    pooled = jnp.sum(y, axis=1, keepdims=True) * (1.0 / p)        # (R, 1) lane reduce
    prod = w1_ref[...] * pooled                                    # (R, C4)
    if nb == 1:
        # Single image per block: plain sublane reduce (no segment matmuls needed).
        t1 = jnp.sum(prod, axis=0, keepdims=True) + b1_ref[...]    # (1, C4)
        t1 = t1 * jax.nn.sigmoid(t1)
        t1_rows = t1                                               # broadcasts over R
    else:
        if tail:
            # Last block may contain padded garbage rows; zero them so the
            # segment matmul cannot leak NaN/Inf into valid images.
            rid = jax.lax.broadcasted_iota(jnp.int32, (r, 1), 0)
            valid = n_rows - pl.program_id(0) * r
            prod = jnp.where(rid < valid, prod, 0.0)
        # Squeeze contraction (over channels) for all images at once, on the MXU.
        t1 = jnp.dot(seg_ref[...], prod,
                     preferred_element_type=jnp.float32) + b1_ref[...]   # (nb, C4)
        t1 = t1 * jax.nn.sigmoid(t1)
        # Broadcast each image's squeezed activation back to its C rows (MXU).
        t1_rows = jnp.dot(segt_ref[...], t1,
                          preferred_element_type=jnp.float32)            # (R, C4)
    t2 = jnp.sum(w2_ref[...] * t1_rows, axis=1, keepdims=True) + b2_ref[...]  # (R, 1)
    gate = jax.nn.sigmoid(t2)

    # Gate the ORIGINAL input (matches the PyTorch module); one full-block store.
    out_ref[...] = (x * gate).astype(out_ref.dtype)


def _pick_images_per_step(n, c, p, *, target_block_bytes=2 << 20,
                          min_grid_steps=4, seg_budget_bytes=2 << 20):
    """Whole images per grid step: ~2 MiB x-blocks, >=4 grid steps, bounded aux."""
    bytes_per_image = c * p * 4
    nb_bytes = max(1, target_block_bytes // bytes_per_image)          # VMEM / roofline
    nb_steps = max(1, -(-n // min_grid_steps))                        # keep the pipeline fed
    nb_seg = max(1, math.isqrt(max(1, seg_budget_bytes // (8 * c))))  # segment matrices small
    nb = int(max(1, min(nb_bytes, nb_steps, nb_seg, n)))
    # BlockSpec: the sublane dim (nb*c) must be a multiple of 8.
    mult = 8 // math.gcd(c, 8)
    if nb % mult:
        nb = max(mult, (nb // mult) * mult)
    return nb


@functools.lru_cache(maxsize=None)
def _tap_masks(h, w):
    """(9, H*W) 0/1 validity masks for the 3x3 taps in the flattened-HW layout."""
    p = h * w
    hh, ww = np.meshgrid(np.arange(h), np.arange(w), indexing="ij")
    hh, ww = hh.reshape(-1), ww.reshape(-1)
    m = np.zeros((9, p), np.float32)
    for kh in range(3):
        for kw in range(3):
            dh, dw = kh - 1, kw - 1
            ok = (hh + dh >= 0) & (hh + dh < h) & (ww + dw >= 0) & (ww + dw < w)
            m[kh * 3 + kw] = ok.astype(np.float32)
    return jnp.asarray(m)


@functools.lru_cache(maxsize=None)
def _segment_matrices(nb, c):
    """0/1 matrices mapping block rows <-> images: (nb, nb*c) and its transpose."""
    img_of_row = np.repeat(np.arange(nb), c)
    seg = (np.arange(nb)[:, None] == img_of_row[None, :]).astype(np.float32)
    return jnp.asarray(seg), jnp.asarray(seg.T)


def repvit_token_mixer(x_nchw, params):
    """x_nchw: (N, C, H, W) float32 -> (N, C, H, W) float32.  jax.jit friendly."""
    N, C, H, W = x_nchw.shape
    C4 = params["w1"].shape[0]
    P = H * W
    nb = _pick_images_per_step(N, C, P)
    R = nb * C
    grid = pl.cdiv(N, nb)

    # Free reshape (no data movement): (N, C, H, W) -> (N*C, H*W), lane-dense spatial axis.
    x2d = x_nchw.reshape(N * C, P)

    # Tiny parameter repacking (fuses/constant-folds under jax.jit; BN scale folded in).
    wdw = params["wdw"].reshape(C, 9) * params["bn_scale"][:, None]   # (C, 9)
    wdw_t = jnp.tile(wdw, (nb, 1))                                    # (R, 9)
    bnb_t = jnp.tile(params["bn_bias"][:, None], (nb, 1))             # (R, 1)
    w1_t = jnp.tile(params["w1"].T, (nb, 1))                          # (R, C4)
    b1_k = params["b1"].reshape(1, C4)                                # (1, C4)
    w2_t = jnp.tile(params["w2"], (nb, 1))                            # (R, C4)
    b2_t = jnp.tile(params["b2"][:, None], (nb, 1))                   # (R, 1)
    mask_k = _tap_masks(H, W)                                         # (9, P)  (cached)
    seg, segt = _segment_matrices(nb, C)                              # (nb, R), (R, nb)

    kernel = functools.partial(_repvit_token_mixer_kernel,
                               nb=nb, c=C, img_w=W, p=P,
                               n_rows=N * C, tail=(N % nb) != 0)

    const = lambda i: (0, 0)
    out2d = pl.pallas_call(
        kernel,
        out_shape=jax.ShapeDtypeStruct((N * C, P), x_nchw.dtype),
        grid_spec=pltpu.PrefetchScalarGridSpec(
            num_scalar_prefetch=0,
            grid=(grid,),
            in_specs=[
                pl.BlockSpec((R, P), lambda i: (i, 0)),    # x: one batch-block per step
                pl.BlockSpec((R, 9), const),               # depthwise weights (resident)
                pl.BlockSpec((R, 1), const),               # folded BN bias
                pl.BlockSpec((9, P), const),               # tap boundary masks
                pl.BlockSpec((R, C4), const),              # SE squeeze weight (tiled)
                pl.BlockSpec((1, C4), const),              # SE squeeze bias
                pl.BlockSpec((R, C4), const),              # SE excite weight (tiled)
                pl.BlockSpec((R, 1), const),               # SE excite bias (tiled)
                pl.BlockSpec((nb, R), const),              # row -> image segment matrix
                pl.BlockSpec((R, nb), const),              # image -> row segment matrix
            ],
            out_specs=pl.BlockSpec((R, P), lambda i: (i, 0)),
        ),
        compiler_params=pltpu.CompilerParams(
            dimension_semantics=("parallel",),
            vmem_limit_bytes=32 * 1024 * 1024),
    )(x2d, wdw_t, bnb_t, mask_k, w1_t, b1_k, w2_t, b2_t, seg, segt)

    return out2d.reshape(N, C, H, W)


def ref_forward(x, p):
    """Pure-JAX reference matching the PyTorch module (NCHW)."""
    C = x.shape[1]
    y = jax.lax.conv_general_dilated(
        x, p["wdw"], window_strides=(1, 1), padding=((1, 1), (1, 1)),
        dimension_numbers=("NCHW", "OIHW", "NCHW"), feature_group_count=C,
        precision=jax.lax.Precision.HIGHEST)
    y = y * p["bn_scale"][None, :, None, None] + p["bn_bias"][None, :, None, None]
    y = y * jax.nn.sigmoid(y)
    pooled = jnp.mean(y, axis=(2, 3))                                        # (N, C)
    t1 = jnp.dot(pooled, p["w1"].T, precision=jax.lax.Precision.HIGHEST) + p["b1"]
    t1 = t1 * jax.nn.sigmoid(t1)
    t2 = jnp.dot(t1, p["w2"].T, precision=jax.lax.Precision.HIGHEST) + p["b2"]
    gate = jax.nn.sigmoid(t2)
    return x * gate[:, :, None, None]


def make_params(key, c):
    c4 = c // 4
    ks = jax.random.split(key, 8)
    gamma = jax.random.uniform(ks[0], (c,), jnp.float32, 0.5, 1.5)
    beta = 0.1 * jax.random.normal(ks[1], (c,), jnp.float32)
    run_mean = 0.1 * jax.random.normal(ks[2], (c,), jnp.float32)
    run_var = jax.random.uniform(ks[3], (c,), jnp.float32, 0.5, 1.5)
    eps = 1e-5
    bn_scale = gamma / jnp.sqrt(run_var + eps)
    bn_bias = beta - run_mean * bn_scale
    return {
        # depthwise conv weight, PyTorch shape (C, 1, 3, 3)
        "wdw": 0.2 * jax.random.normal(ks[4], (c, 1, 3, 3), jnp.float32),
        "bn_scale": bn_scale,
        "bn_bias": bn_bias,
        # SE squeeze: Conv2d(c, c//4, 1) weight (c//4, c), bias (c//4,)
        "w1": 0.2 * jax.random.normal(ks[5], (c4, c), jnp.float32),
        "b1": 0.05 * jax.random.normal(ks[6], (c4,), jnp.float32),
        # SE excite: Conv2d(c//4, c, 1) weight (c, c//4), bias (c,)
        "w2": 0.2 * jax.random.normal(ks[7], (c, c4), jnp.float32),
        "b2": jnp.zeros((c,), jnp.float32),
    }


if __name__ == "__main__":
    # N=8 so the grid has 4 steps (nb=2) and the vectorised multi-image SE path runs.
    N, C, H, W = 8, 16, 16, 16
    key = jax.random.PRNGKey(0)
    kx, kp = jax.random.split(key)
    x = jax.random.normal(kx, (N, C, H, W), jnp.float32)
    params = make_params(kp, C)

    mixer = jax.jit(repvit_token_mixer)          # host repacking folds into the jit graph
    out = jax.block_until_ready(mixer(x, params))
    ref = jax.block_until_ready(ref_forward(x, params))

    assert out.shape == (N, C, H, W)
    # Tolerance leaves headroom for MXU multi-pass f32 rounding in the tiny SE matmuls.
    np.testing.assert_allclose(np.asarray(out), np.asarray(ref), rtol=1e-3, atol=1e-4)

    print("KERNEL_OK")
</pallas_src>

<mosaic_0001>
module attributes {stable_mosaic.version = 11 : i64} {
  func.func @_repvit_token_mixer_kernel(%arg0: i32, %arg1: memref<32x256xf32, #tpu.memory_space<vmem>>, %arg2: memref<32x9xf32, #tpu.memory_space<vmem>>, %arg3: memref<32x1xf32, #tpu.memory_space<vmem>>, %arg4: memref<9x256xf32, #tpu.memory_space<vmem>>, %arg5: memref<32x4xf32, #tpu.memory_space<vmem>>, %arg6: memref<1x4xf32, #tpu.memory_space<vmem>>, %arg7: memref<32x4xf32, #tpu.memory_space<vmem>>, %arg8: memref<32x1xf32, #tpu.memory_space<vmem>>, %arg9: memref<2x32xf32, #tpu.memory_space<vmem>>, %arg10: memref<32x2xf32, #tpu.memory_space<vmem>>, %arg11: memref<32x256xf32, #tpu.memory_space<vmem>>) attributes {dimension_semantics = [#tpu.dimension_semantics<parallel>], iteration_bounds = array<i64: 4>, scalar_prefetch = 0 : i64, scratch_operands = 0 : i64, tpu.core_type = #tpu.core_type<tc>, window_params = [{transform_indices = @transform_0, window_bounds = array<i64: 32, 256>}, {pipeline_mode = #tpu.pipeline_mode<synchronous>, transform_indices = @transform_1, window_bounds = array<i64: 32, 9>}, {pipeline_mode = #tpu.pipeline_mode<synchronous>, transform_indices = @transform_2, window_bounds = array<i64: 32, 1>}, {pipeline_mode = #tpu.pipeline_mode<synchronous>, transform_indices = @transform_3, window_bounds = array<i64: 9, 256>}, {pipeline_mode = #tpu.pipeline_mode<synchronous>, transform_indices = @transform_4, window_bounds = array<i64: 32, 4>}, {pipeline_mode = #tpu.pipeline_mode<synchronous>, transform_indices = @transform_5, window_bounds = array<i64: 1, 4>}, {pipeline_mode = #tpu.pipeline_mode<synchronous>, transform_indices = @transform_6, window_bounds = array<i64: 32, 4>}, {pipeline_mode = #tpu.pipeline_mode<synchronous>, transform_indices = @transform_7, window_bounds = array<i64: 32, 1>}, {pipeline_mode = #tpu.pipeline_mode<synchronous>, transform_indices = @transform_8, window_bounds = array<i64: 2, 32>}, {pipeline_mode = #tpu.pipeline_mode<synchronous>, transform_indices = @transform_9, window_bounds = array<i64: 32, 2>}, {transform_indices = @transform_10, window_bounds = array<i64: 32, 256>}]} {
    %c0 = arith.constant 0 : index
    %c0_0 = arith.constant 0 : index
    %0 = vector.load %arg1[%c0, %c0_0] : memref<32x256xf32, #tpu.memory_space<vmem>>, vector<32x256xf32>
    %c0_1 = arith.constant 0 : index
    %c0_2 = arith.constant 0 : index
    %1 = vector.load %arg2[%c0_1, %c0_2] : memref<32x9xf32, #tpu.memory_space<vmem>>, vector<32x9xf32>
    %c0_3 = arith.constant 0 : index
    %c0_4 = arith.constant 0 : index
    %2 = vector.load %arg4[%c0_3, %c0_4] : memref<9x256xf32, #tpu.memory_space<vmem>>, vector<9x256xf32>
    %3 = vector.extract_strided_slice %1 {offsets = [0, 4], sizes = [32, 1], strides = [1, 1]} : vector<32x9xf32> to vector<32x1xf32>
    %4 = vector.broadcast %3 : vector<32x1xf32> to vector<32x256xf32>
    %5 = arith.mulf %0, %4 : vector<32x256xf32>
    %c17_i32 = arith.constant 17 : i32
    %6 = tpu.dynamic_rotate %0 by %c17_i32 dim 1 : vector<32x256xf32>, i32 -> vector<32x256xf32>
    %7 = vector.extract_strided_slice %2 {offsets = [0, 0], sizes = [1, 256], strides = [1, 1]} : vector<9x256xf32> to vector<1x256xf32>
    %8 = vector.broadcast %7 : vector<1x256xf32> to vector<32x256xf32>
    %9 = arith.mulf %6, %8 : vector<32x256xf32>
    %10 = vector.extract_strided_slice %1 {offsets = [0, 0], sizes = [32, 1], strides = [1, 1]} : vector<32x9xf32> to vector<32x1xf32>
    %11 = vector.broadcast %10 : vector<32x1xf32> to vector<32x256xf32>
    %12 = arith.mulf %9, %11 : vector<32x256xf32>
    %13 = arith.addf %5, %12 : vector<32x256xf32>
    %c16_i32 = arith.constant 16 : i32
    %14 = tpu.dynamic_rotate %0 by %c16_i32 dim 1 : vector<32x256xf32>, i32 -> vector<32x256xf32>
    %15 = vector.extract_strided_slice %2 {offsets = [1, 0], sizes = [1, 256], strides = [1, 1]} : vector<9x256xf32> to vector<1x256xf32>
    %16 = vector.broadcast %15 : vector<1x256xf32> to vector<32x256xf32>
    %17 = arith.mulf %14, %16 : vector<32x256xf32>
    %18 = vector.extract_strided_slice %1 {offsets = [0, 1], sizes = [32, 1], strides = [1, 1]} : vector<32x9xf32> to vector<32x1xf32>
    %19 = vector.broadcast %18 : vector<32x1xf32> to vector<32x256xf32>
    %20 = arith.mulf %17, %19 : vector<32x256xf32>
    %21 = arith.addf %13, %20 : vector<32x256xf32>
    %c15_i32 = arith.constant 15 : i32
    %22 = tpu.dynamic_rotate %0 by %c15_i32 dim 1 : vector<32x256xf32>, i32 -> vector<32x256xf32>
    %23 = vector.extract_strided_slice %2 {offsets = [2, 0], sizes = [1, 256], strides = [1, 1]} : vector<9x256xf32> to vector<1x256xf32>
    %24 = vector.broadcast %23 : vector<1x256xf32> to vector<32x256xf32>
    %25 = arith.mulf %22, %24 : vector<32x256xf32>
    %26 = vector.extract_strided_slice %1 {offsets = [0, 2], sizes = [32, 1], strides = [1, 1]} : vector<32x9xf32> to vector<32x1xf32>
    %27 = vector.broadcast %26 : vector<32x1xf32> to vector<32x256xf32>
    %28 = arith.mulf %25, %27 : vector<32x256xf32>
    %29 = arith.addf %21, %28 : vector<32x256xf32>
    %c1_i32 = arith.constant 1 : i32
    %30 = tpu.dynamic_rotate %0 by %c1_i32 dim 1 : vector<32x256xf32>, i32 -> vector<32x256xf32>
    %31 = vector.extract_strided_slice %2 {offsets = [3, 0], sizes = [1, 256], strides = [1, 1]} : vector<9x256xf32> to vector<1x256xf32>
    %32 = vector.broadcast %31 : vector<1x256xf32> to vector<32x256xf32>
    %33 = arith.mulf %30, %32 : vector<32x256xf32>
    %34 = vector.extract_strided_slice %1 {offsets = [0, 3], sizes = [32, 1], strides = [1, 1]} : vector<32x9xf32> to vector<32x1xf32>
    %35 = vector.broadcast %34 : vector<32x1xf32> to vector<32x256xf32>
    %36 = arith.mulf %33, %35 : vector<32x256xf32>
    %37 = arith.addf %29, %36 : vector<32x256xf32>
    %c255_i32 = arith.constant 255 : i32
    %38 = tpu.dynamic_rotate %0 by %c255_i32 dim 1 : vector<32x256xf32>, i32 -> vector<32x256xf32>
    %39 = vector.extract_strided_slice %2 {offsets = [5, 0], sizes = [1, 256], strides = [1, 1]} : vector<9x256xf32> to vector<1x256xf32>
    %40 = vector.broadcast %39 : vector<1x256xf32> to vector<32x256xf32>
    %41 = arith.mulf %38, %40 : vector<32x256xf32>
    %42 = vector.extract_strided_slice %1 {offsets = [0, 5], sizes = [32, 1], strides = [1, 1]} : vector<32x9xf32> to vector<32x1xf32>
    %43 = vector.broadcast %42 : vector<32x1xf32> to vector<32x256xf32>
    %44 = arith.mulf %41, %43 : vector<32x256xf32>
    %45 = arith.addf %37, %44 : vector<32x256xf32>
    %c241_i32 = arith.constant 241 : i32
    %46 = tpu.dynamic_rotate %0 by %c241_i32 dim 1 : vector<32x256xf32>, i32 -> vector<32x256xf32>
    %47 = vector.extract_strided_slice %2 {offsets = [6, 0], sizes = [1, 256], strides = [1, 1]} : vector<9x256xf32> to vector<1x256xf32>
    %48 = vector.broadcast %47 : vector<1x256xf32> to vector<32x256xf32>
    %49 = arith.mulf %46, %48 : vector<32x256xf32>
    %50 = vector.extract_strided_slice %1 {offsets = [0, 6], sizes = [32, 1], strides = [1, 1]} : vector<32x9xf32> to vector<32x1xf32>
    %51 = vector.broadcast %50 : vector<32x1xf32> to vector<32x256xf32>
    %52 = arith.mulf %49, %51 : vector<32x256xf32>
    %53 = arith.addf %45, %52 : vector<32x256xf32>
    %c240_i32 = arith.constant 240 : i32
    %54 = tpu.dynamic_rotate %0 by %c240_i32 dim 1 : vector<32x256xf32>, i32 -> vector<32x256xf32>
    %55 = vector.extract_strided_slice %2 {offsets = [7, 0], sizes = [1, 256], strides = [1, 1]} : vector<9x256xf32> to vector<1x256xf32>
    %56 = vector.broadcast %55 : vector<1x256xf32> to vector<32x256xf32>
    %57 = arith.mulf %54, %56 : vector<32x256xf32>
    %58 = vector.extract_strided_slice %1 {offsets = [0, 7], sizes = [32, 1], strides = [1, 1]} : vector<32x9xf32> to vector<32x1xf32>
    %59 = vector.broadcast %58 : vector<32x1xf32> to vector<32x256xf32>
    %60 = arith.mulf %57, %59 : vector<32x256xf32>
    %61 = arith.addf %53, %60 : vector<32x256xf32>
    %c239_i32 = arith.constant 239 : i32
    %62 = tpu.dynamic_rotate %0 by %c239_i32 dim 1 : vector<32x256xf32>, i32 -> vector<32x256xf32>
    %63 = vector.extract_strided_slice %2 {offsets = [8, 0], sizes = [1, 256], strides = [1, 1]} : vector<9x256xf32> to vector<1x256xf32>
    %64 = vector.broadcast %63 : vector<1x256xf32> to vector<32x256xf32>
    %65 = arith.mulf %62, %64 : vector<32x256xf32>
    %66 = vector.extract_strided_slice %1 {offsets = [0, 8], sizes = [32, 1], strides = [1, 1]} : vector<32x9xf32> to vector<32x1xf32>
    %67 = vector.broadcast %66 : vector<32x1xf32> to vector<32x256xf32>
    %68 = arith.mulf %65, %67 : vector<32x256xf32>
    %69 = arith.addf %61, %68 : vector<32x256xf32>
    %c0_5 = arith.constant 0 : index
    %c0_6 = arith.constant 0 : index
    %70 = vector.load %arg3[%c0_5, %c0_6] : memref<32x1xf32, #tpu.memory_space<vmem>>, vector<32x1xf32>
    %71 = vector.broadcast %70 : vector<32x1xf32> to vector<32x256xf32>
    %72 = arith.addf %69, %71 : vector<32x256xf32>
    %73 = arith.negf %72 : vector<32x256xf32>
    %74 = math.exp %73 : vector<32x256xf32>
    %cst = arith.constant 1.000000e+00 : f32
    %75 = vector.broadcast %cst : f32 to vector<32x256xf32>
    %76 = arith.addf %75, %74 : vector<32x256xf32>
    %77 = arith.divf %75, %76 : vector<32x256xf32>
    %78 = arith.mulf %72, %77 : vector<32x256xf32>
    %cst_7 = arith.constant dense<0.000000e+00> : vector<32xf32>
    %79 = vector.multi_reduction <add>, %78, %cst_7 [1] : vector<32x256xf32> to vector<32xf32>
    %80 = vector.shape_cast %79 : vector<32xf32> to vector<32x1xf32>
    %cst_8 = arith.constant 3.906250e-03 : f32
    %81 = vector.broadcast %cst_8 : f32 to vector<32x1xf32>
    %82 = arith.mulf %80, %81 : vector<32x1xf32>
    %c0_9 = arith.constant 0 : index
    %c0_10 = arith.constant 0 : index
    %83 = vector.load %arg5[%c0_9, %c0_10] : memref<32x4xf32, #tpu.memory_space<vmem>>, vector<32x4xf32>
    %84 = vector.broadcast %82 : vector<32x1xf32> to vector<32x4xf32>
    %85 = arith.mulf %83, %84 : vector<32x4xf32>
    %c0_11 = arith.constant 0 : index
    %c0_12 = arith.constant 0 : index
    %86 = vector.load %arg9[%c0_11, %c0_12] : memref<2x32xf32, #tpu.memory_space<vmem>>, vector<2x32xf32>
    %cst_13 = arith.constant dense<0.000000e+00> : vector<2x4xf32>
    %87 = tpu.matmul %86, %85, %cst_13 {dimension_numbers = #tpu.dot_dimension_numbers<[1], [0], [0], [1], [0, 0, 1, 1], [], []>} : vector<2x32xf32>, vector<32x4xf32>, vector<2x4xf32> -> vector<2x4xf32>
    %c0_14 = arith.constant 0 : index
    %c0_15 = arith.constant 0 : index
    %88 = vector.load %arg6[%c0_14, %c0_15] : memref<1x4xf32, #tpu.memory_space<vmem>>, vector<1x4xf32>
    %89 = vector.broadcast %88 : vector<1x4xf32> to vector<2x4xf32>
    %90 = arith.addf %87, %89 : vector<2x4xf32>
    %91 = arith.negf %90 : vector<2x4xf32>
    %92 = math.exp %91 : vector<2x4xf32>
    %cst_16 = arith.constant 1.000000e+00 : f32
    %93 = vector.broadcast %cst_16 : f32 to vector<2x4xf32>
    %94 = arith.addf %93, %92 : vector<2x4xf32>
    %95 = arith.divf %93, %94 : vector<2x4xf32>
    %96 = arith.mulf %90, %95 : vector<2x4xf32>
    %c0_17 = arith.constant 0 : index
    %c0_18 = arith.constant 0 : index
    %97 = vector.load %arg10[%c0_17, %c0_18] : memref<32x2xf32, #tpu.memory_space<vmem>>, vector<32x2xf32>
    %cst_19 = arith.constant dense<0.000000e+00> : vector<32x4xf32>
    %98 = tpu.matmul %97, %96, %cst_19 {dimension_numbers = #tpu.dot_dimension_numbers<[1], [0], [0], [1], [0, 0, 1, 1], [], []>} : vector<32x2xf32>, vector<2x4xf32>, vector<32x4xf32> -> vector<32x4xf32>
    %c0_20 = arith.constant 0 : index
    %c0_21 = arith.constant 0 : index
    %99 = vector.load %arg7[%c0_20, %c0_21] : memref<32x4xf32, #tpu.memory_space<vmem>>, vector<32x4xf32>
    %100 = arith.mulf %99, %98 : vector<32x4xf32>
    %cst_22 = arith.constant dense<0.000000e+00> : vector<32xf32>
    %101 = vector.multi_reduction <add>, %100, %cst_22 [1] : vector<32x4xf32> to vector<32xf32>
    %102 = vector.shape_cast %101 : vector<32xf32> to vector<32x1xf32>
    %c0_23 = arith.constant 0 : index
    %c0_24 = arith.constant 0 : index
    %103 = vector.load %arg8[%c0_23, %c0_24] : memref<32x1xf32, #tpu.memory_space<vmem>>, vector<32x1xf32>
    %104 = arith.addf %102, %103 : vector<32x1xf32>
    %105 = arith.negf %104 : vector<32x1xf32>
    %106 = math.exp %105 : vector<32x1xf32>
    %cst_25 = arith.constant 1.000000e+00 : f32
    %107 = vector.broadcast %cst_25 : f32 to vector<32x1xf32>
    %108 = arith.addf %107, %106 : vector<32x1xf32>
    %109 = arith.divf %107, %108 : vector<32x1xf32>
    %110 = vector.broadcast %109 : vector<32x1xf32> to vector<32x256xf32>
    %111 = arith.mulf %0, %110 : vector<32x256xf32>
    %c0_26 = arith.constant 0 : index
    %c0_27 = arith.constant 0 : index
    %112 = vector.load %arg11[%c0_26, %c0_27] : memref<32x256xf32, #tpu.memory_space<vmem>>, vector<32x256xf32>
    tpu.vector_store %arg11[%c0_26, %c0_27], %111 {strides = array<i32>} : memref<32x256xf32, #tpu.memory_space<vmem>>, vector<32x256xf32>,
    return
  }
  func.func @transform_0(%arg0: i32) -> (i32, i32) {
    %c0_i32 = arith.constant 0 : i32
    %c0_i32_0 = arith.constant 0 : i32
    return %arg0, %c0_i32 : i32, i32
  }
  func.func @transform_1(%arg0: i32) -> (i32, i32) {
    %c0_i32 = arith.constant 0 : i32
    %c0_i32_0 = arith.constant 0 : i32
    %c0_i32_1 = arith.constant 0 : i32
    return %c0_i32, %c0_i32_0 : i32, i32
  }
  func.func @transform_2(%arg0: i32) -> (i32, i32) {
    %c0_i32 = arith.constant 0 : i32
    %c0_i32_0 = arith.constant 0 : i32
    %c0_i32_1 = arith.constant 0 : i32
    return %c0_i32, %c0_i32_0 : i32, i32
  }
  func.func @transform_3(%arg0: i32) -> (i32, i32) {
    %c0_i32 = arith.constant 0 : i32
    %c0_i32_0 = arith.constant 0 : i32
    %c0_i32_1 = arith.constant 0 : i32
    return %c0_i32, %c0_i32_0 : i32, i32
  }
  func.func @transform_4(%arg0: i32) -> (i32, i32) {
    %c0_i32 = arith.constant 0 : i32
    %c0_i32_0 = arith.constant 0 : i32
    %c0_i32_1 = arith.constant 0 : i32
    return %c0_i32, %c0_i32_0 : i32, i32
  }
  func.func @transform_5(%arg0: i32) -> (i32, i32) {
    %c0_i32 = arith.constant 0 : i32
    %c0_i32_0 = arith.constant 0 : i32
    %c0_i32_1 = arith.constant 0 : i32
    return %c0_i32, %c0_i32_0 : i32, i32
  }
  func.func @transform_6(%arg0: i32) -> (i32, i32) {
    %c0_i32 = arith.constant 0 : i32
    %c0_i32_0 = arith.constant 0 : i32
    %c0_i32_1 = arith.constant 0 : i32
    return %c0_i32, %c0_i32_0 : i32, i32
  }
  func.func @transform_7(%arg0: i32) -> (i32, i32) {
    %c0_i32 = arith.constant 0 : i32
    %c0_i32_0 = arith.constant 0 : i32
    %c0_i32_1 = arith.constant 0 : i32
    return %c0_i32, %c0_i32_0 : i32, i32
  }
  func.func @transform_8(%arg0: i32) -> (i32, i32) {
    %c0_i32 = arith.constant 0 : i32
    %c0_i32_0 = arith.constant 0 : i32
    %c0_i32_1 = arith.constant 0 : i32
    return %c0_i32, %c0_i32_0 : i32, i32
  }
  func.func @transform_9(%arg0: i32) -> (i32, i32) {
    %c0_i32 = arith.constant 0 : i32
    %c0_i32_0 = arith.constant 0 : i32
    %c0_i32_1 = arith.constant 0 : i32
    return %c0_i32, %c0_i32_0 : i32, i32
  }
  func.func @transform_10(%arg0: i32) -> (i32, i32) {
    %c0_i32 = arith.constant 0 : i32
    %c0_i32_0 = arith.constant 0 : i32
    return %arg0, %c0_i32 : i32, i32
  }
}

</mosaic_0001>

<bundles_post_ra>
// kernel: repvit_token_mixer.1
= control target key start
LH: loop header
LB: loop body
LE: loop exit
PB: predicated region body
PF: predicated region fallthrough
CT: control target
= control target key end

     0   :  { %s1711_s13 = smov 0   ;;  %s2546_s0 = inlined_call_operand.vmem [shape: f32[128,256], index: 0, kind: input, shape index: {}]   ;;  %s2547_s1 = inlined_call_operand.vmem [shape: f32[32,9], index: 1, kind: input, shape index: {}]   ;;  %s2548_s2 = inlined_call_operand.vmem [shape: f32[32,1], index: 2, kind: input, shape index: {}]   ;;  %s2549_s3 = inlined_call_operand.vmem [shape: f32[9,256], index: 3, kind: input, shape index: {}]   ;;  %s2550_s4 = inlined_call_operand.vmem [shape: f32[32,4], index: 4, kind: input, shape index: {}]   ;;  %s2551_s5 = inlined_call_operand.vmem [shape: f32[1,4], index: 5, kind: input, shape index: {}]   ;;  %s2552_s6 = inlined_call_operand.vmem [shape: f32[32,4], index: 6, kind: input, shape index: {}]   ;;  %s2553_s7 = inlined_call_operand.vmem [shape: f32[32,1], index: 7, kind: input, shape index: {}]   ;;  %s2554_s8 = inlined_call_operand.vmem [shape: f32[2,32], index: 8, kind: input, shape index: {}]   ;;  %s2555_s9 = inlined_call_operand.vmem [shape: f32[32,2], index: 9, kind: input, shape index: {}]   ;;  %s2556_s10 = inlined_call_operand.vmem [shape: f32[128,256], index: 10, kind: output, shape index: {}]  }
   0x1 LB: > { %s1452_s14 = sadd.s32 4294967295, %s1635_s13   ;;  %p1456_p0 = scmp.ge.s32.totalorder %s1635_s13, 1  ;;  %s1635_s13 = sphi %s1711_s13, %s20_s13  }
   0x2   : > { %p314_p1 = scmp.lt.s32.totalorder %s1635_s13, 5 }
   0x4   : > { %p315_p2 = pnand %p1456_p0, %p314_p1 }
   0x5   : > { %s1457_s19 = sshll.u32 (!%p315_p2), %s1452_s14, 2  ;;  %s1639_s26 = smov (!%p315_p2), 17  }
   0x6   : > { %318 = sbr.rel (%p315_p2) target bundleno = 1296 (0x510), region = 60  ;;  %p355_p3 = scmp.lt.s32.totalorder (!%p315_p2), %s1457_s19, 15 }
   0x7   : > { %s1642_s29 = smov (!%p315_p2), 16   ;;  %s1644_s30 = smov (!%p315_p2), 15  }
   0x8   : > { %s1645_s11 = smov (!%p315_p2), 1   ;;  %s1648_s12 = smov (!%p315_p2), 127  }
   0x9   : > { %s1649_s14 = smov (!%p315_p2), 113   ;;  %s1651_s20 = smov (!%p315_p2), 112  }
   0xa   : > { %s1652_s21 = smov (!%p315_p2), 111  }
   0xb   : > { %v1722_v0 = vld [vmem:[%s2547_s1 + $0x10] sm:$0xff]  ;;  %v1727_v1 = vld [vmem:[%s2547_s1 + $0x18] sm:$0xff]  ;;  %v1637_v2 = vmov 4   ;;  %v1734_v3 = vld [vmem:[%s2547_s1 + $0x8] sm:$0xff]  ;;  %s2558_s19 = smov (!%p355_p3, %s1457_s19), 15  ;;  %v1638_v4 = vmov 1   ;;  %v428_v19 = vlaneseq }
   0xc   : > { %1546 = vset.pattern.permute.xlu1 %v1637_v2  ;;  %1545 = vset.pattern.permute.xlu0 %v1637_v2  ;;  %s1487_s22 = sshll.u32 %s2558_s19, 4  ;;  %v1640_v7 = vmov 0   ;;  %v1641_v11 = vmov 2   ;;  %v1780_v12 = vld [vmem:[%s2547_s1] sm:$0xff]  ;;  %v1643_v15 = vmov 3   ;;  %v1646_v17 = vmov 5  }
   0xd   : > { %396 = vperm.xlu1 %1546, %v1722_v0   ;;  %401 = vperm.xlu0 %1545, %v1727_v1   ;;  %s1745_s25 = scalar_lea.vmem %s2546_s0, %s1487_s22  ;;  %v1647_v18 = vmov 6   ;;  %v1650_v20 = vmov 7   ;;  %v1868_v21 = vshrl.u32 %v428_v19, 7  ;;  %v1875_v24 = vand.u32 127, %v428_v19  ;;  %v1881_v26 = vld [vmem:[%s2549_s3] sm:$0xff]  ;;  %v1886_v27 = vld [vmem:[%s2549_s3 + $0x8] sm:$0xff] }
   0xe   : > { %v1748_v5 = vld [vmem:[%s1745_s25 + $0x30] sm:$0xff]  ;;  %v1753_v6 = vld [vmem:[%s1745_s25 + $0x38] sm:$0xff]  ;;  %v1762_v8 = vld [vmem:[%s1745_s25 + $0x20] sm:$0xff]  ;;  %v1653_v51 = vmov 8   ;;  %vm1655_vm8 = vmmov 0   ;;  %vm1118_vm9 = vcmask 261120  }
   0xf   : > { %v1768_v9 = vld [vmem:[%s1745_s25 + $0x10] sm:$0xff]  ;;  %v1771_v10 = vld [vmem:[%s1745_s25 + $0x28] sm:$0xff]  ;;  %v1793_v13 = vld [vmem:[%s1745_s25 + $0x18] sm:$0xff]  ;;  %v441_v25 = vsub.s32 0, %v1868_v21  ;;  %vm430_vm0 = vcmp.lt.s32.totalorder %v1875_v24, 17  ;;  %v514_v19 = vsub.s32 1, %v1868_v21 }
  0x10   : > { %v1796_v14 = vld [vmem:[%s1745_s25 + $0x8] sm:$0xff]  ;;  %v1821_v16 = vld [vmem:[%s1745_s25] sm:$0xff]  ;;  %vm503_vm1 = vcmp.lt.s32.totalorder %v1875_v24, 16  ;;  %vm576_vm2 = vcmp.lt.s32.totalorder %v1875_v24, 15  ;;  %vm649_vm3 = vcmp.lt.s32.totalorder %v1875_v24, 1  ;;  %vm722_vm4 = vcmp.lt.s32.totalorder %v1875_v24, 127 }
  0x11   : > { %391 = vperm.xlu0 %1545, %v1734_v3   ;;  %1547 = vset.pattern.permute.xlu1 %v1638_v4  ;;  %v1896_v30 = vrot.slane %v1881_v26, %v441_v25  ;;  %v1899_v31 = vrot.slane %v1886_v27, %v441_v25  ;;  %vm795_vm5 = vcmp.lt.s32.totalorder %v1875_v24, 113  ;;  %vm868_vm6 = vcmp.lt.s32.totalorder %v1875_v24, 112 }
  0x12   : > { %418 = vrot.lane.b32.xlu1 %v1748_v5, %s1639_s26  ;;  %vm941_vm7 = vcmp.lt.s32.totalorder %v1875_v24, 111  ;;  %vm1203_vm10 = vcmask 15360   ;;  %vm1216_vm11 = vcmask 1041408   ;;  %vm1313_vm12 = vcmask 31744  }
  0x15   : > { %1548 = vset.pattern.permute.xlu0 %v1640_v7 }
  0x16   : > { %468 = vperm.xlu0 %1548, %v1727_v1   ;;  %426 = vrot.lane.b32.xlu1 %v1753_v6, %s1639_s26 }
  0x1a   : > { %464 = vperm.xlu0 %1548, %v1722_v0   ;;  %541 = vperm.xlu1 %1547, %v1727_v1  }
  0x1e   : > { %460 = vperm.xlu0 %1548, %v1734_v3   ;;  %416 = vrot.lane.b32.xlu1 %v1762_v8, %s1639_s26 }
  0x1f   : > { %1549 = vset.pattern.permute.xlu1 %v1641_v11 }
  0x22   : > { %414 = vrot.lane.b32.xlu0 %v1768_v9, %s1639_s26  ;;  %424 = vrot.lane.b32.xlu1 %v1771_v10, %s1639_s26 }
  0x26   : > { %456 = vperm.xlu0 %1548, %v1780_v12   ;;  %493 = vrot.lane.b32.xlu1 %v1748_v5, %s1642_s29 }
  0x2a   : > { %1551 = vset.pattern.permute.xlu0 %v1638_v4  ;;  %501 = vrot.lane.b32.xlu1 %v1753_v6, %s1642_s29 }
  0x2b   : > { %537 = vperm.xlu0 %1551, %v1722_v0  }
  0x2e   : > { %614 = vperm.xlu1 %1549, %v1727_v1  }
  0x2f   : > { %533 = vperm.xlu0 %1551, %v1734_v3  }
  0x32   : > { %1550 = vset.pattern.permute.xlu1 %v1637_v2 }
  0x33   : > { %1552 = vset.pattern.permute.xlu0 %v1641_v11  ;;  %386 = vperm.xlu1 %1550, %v1780_v12  }
  0x34   : > { %610 = vperm.xlu0 %1552, %v1722_v0  }
  0x37   : > { %422 = vrot.lane.b32.xlu1 %v1793_v13, %s1639_s26 }
  0x38   : > { %420 = vrot.lane.b32.xlu0 %v1796_v14, %s1639_s26  ;;  %1553 = vset.pattern.permute.xlu1 %v1643_v15 }
  0x3b   : > { %491 = vrot.lane.b32.xlu1 %v1762_v8, %s1642_s29 }
  0x3c   : > { %497 = vrot.lane.b32.xlu0 %v1793_v13, %s1642_s29 }
  0x3f   : > { %499 = vrot.lane.b32.xlu1 %v1771_v10, %s1642_s29 }
  0x40   : > { %564 = vrot.lane.b32.xlu0 %v1762_v8, %s1644_s30 }
  0x43   : > { %566 = vrot.lane.b32.xlu1 %v1748_v5, %s1644_s30 }
  0x44   : > { %606 = vperm.xlu0 %1552, %v1734_v3  }
  0x47   : > { %574 = vrot.lane.b32.xlu1 %v1753_v6, %s1644_s30 }
  0x48   : > { %647 = vrot.lane.b32.xlu0 %v1753_v6, %s1645_s11 }
  0x4b   : > { %687 = vperm.xlu1 %1553, %v1727_v1  }
  0x4c   : > { %562 = vrot.lane.b32.xlu0 %v1768_v9, %s1644_s30 }
  0x4f   : > { %412 = vrot.lane.b32.xlu1 %v1821_v16, %s1639_s26  ;;  %s366_s26 = scalar_lea.vmem %s2556_s10, %s1487_s22 }
  0x50   : > { %602 = vperm.xlu0 %1552, %v1780_v12   ;;  %1554 = vset.pattern.permute.xlu1 %v1638_v4 }
  0x53   : > { %489 = vrot.lane.b32.xlu1 %v1768_v9, %s1642_s29 }
  0x54   : > { %1556 = vset.pattern.permute.xlu0 %v1643_v15 }
  0x55   : > { %679 = vperm.xlu0 %1556, %v1734_v3  }
  0x57   : > { %529 = vperm.xlu1 %1554, %v1780_v12  }
  0x59   : > { %1557 = vset.pattern.permute.xlu0 %v1646_v17 }
  0x5a   : > { %760 = vperm.xlu0 %1557, %v1727_v1  }
  0x5b   : > { %572 = vrot.lane.b32.xlu1 %v1771_v10, %s1644_s30 }
  0x5c   : > { %1555 = vset.pattern.permute.xlu1 %v1643_v15 }
  0x5e   : > { %756 = vperm.xlu0 %1557, %v1722_v0  }
  0x5f   : > { %639 = vrot.lane.b32.xlu1 %v1748_v5, %s1645_s11 }
  0x62   : > { %568 = vrot.lane.b32.xlu0 %v1796_v14, %s1644_s30 }
  0x63   : > { %683 = vperm.xlu1 %1555, %v1722_v0  }
  0x66   : > { %643 = vrot.lane.b32.xlu0 %v1793_v13, %s1645_s11 }
  0x67   : > { %487 = vrot.lane.b32.xlu1 %v1821_v16, %s1642_s29 }
  0x68   : > { %1558 = vset.pattern.permute.xlu1 %v1647_v18 }
  0x6a   : > { %710 = vrot.lane.b32.xlu0 %v1762_v8, %s1648_s12 }
  0x6b   : > { %495 = vrot.lane.b32.xlu1 %v1796_v14, %s1642_s29 }
  0x6e   : > { %752 = vperm.xlu0 %1557, %v1734_v3  }
  0x6f   : > { %570 = vrot.lane.b32.xlu1 %v1793_v13, %s1644_s30 }
  0x72   : > { %793 = vrot.lane.b32.xlu0 %v1753_v6, %s1649_s14 }
  0x73   : > { %637 = vrot.lane.b32.xlu1 %v1762_v8, %s1645_s11 }
  0x76   : > { %708 = vrot.lane.b32.xlu0 %v1768_v9, %s1648_s12 }
  0x77   : > { %645 = vrot.lane.b32.xlu1 %v1771_v10, %s1645_s11 }
  0x7a   : > { %748 = vperm.xlu0 %1557, %v1780_v12  }
  0x7b   : > { %712 = vrot.lane.b32.xlu1 %v1748_v5, %s1648_s12 }
  0x7e   : > { %1561 = vset.pattern.permute.xlu0 %v1647_v18 }
  0x7f   : > { %825 = vperm.xlu0 %1561, %v1734_v3   ;;  %720 = vrot.lane.b32.xlu1 %v1753_v6, %s1648_s12 }
  0x83   : > { %1562 = vset.pattern.permute.xlu0 %v1650_v20  ;;  %833 = vperm.xlu1 %1558, %v1727_v1   ;;  %v1001_v20 = vld [vmem:[%s2548_s2 + $0x18] sm:$0xff] }
  0x84   : > { %906 = vperm.xlu0 %1562, %v1727_v1  }
  0x87   : > { %560 = vrot.lane.b32.xlu1 %v1821_v16, %s1644_s30 }
  0x88   : > { %v1870_v22 = vpop.permute.xlu1 %396  ;;  %v402_v23 = vpop.permute.xlu0 %401  ;;  %902 = vperm.xlu0 %1562, %v1722_v0   ;;  %1559 = vset.pattern.permute.xlu1 %v1643_v15 }
  0x89   : > { %v410_v36 = vmul.f32 %v402_v23, %v1748_v5  ;;  %v411_v37 = vmul.f32 %v402_v23, %v1753_v6 }
  0x8b   : > { %635 = vrot.lane.b32.xlu1 %v1768_v9, %s1645_s11 }
  0x8c   : > { %v419_v28 = vpop.permute.xlu1 %418  ;;  %v1890_v29 = vpop.permute.xlu0 %391  ;;  %714 = vrot.lane.b32.xlu0 %v1796_v14, %s1648_s12 }
  0x8d   : > { %v406_v4 = vmul.f32 %v1890_v29, %v1768_v9  ;;  %v407_v11 = vmul.f32 %v1890_v29, %v1793_v13 }
  0x8f   : > { %675 = vperm.xlu1 %1559, %v1780_v12  }
  0x90   : > { %v427_v32 = vpop.permute.xlu1 %426  ;;  %789 = vrot.lane.b32.xlu0 %v1793_v13, %s1649_s14 }
  0x91   : > { %v434_v33 = vsel %vm430_vm0, %v419_v28, %v427_v32  ;;  %v438_v34 = vsel %vm430_vm0, %v427_v32, %v419_v28  ;;  %v469_v35 = vpop.permute.xlu0 %468 }
  0x92   : > { %v453_v38 = vmul.f32 %v1896_v30, %v438_v34  ;;  %v454_v39 = vmul.f32 %v1899_v31, %v434_v33 }
  0x93   : > { %718 = vrot.lane.b32.xlu1 %v1771_v10, %s1648_s12 }
  0x94   : > { %v477_v40 = vmul.f32 %v469_v35, %v453_v38  ;;  %v478_v41 = vmul.f32 %v469_v35, %v454_v39  ;;  %856 = vrot.lane.b32.xlu0 %v1762_v8, %s1651_s20  ;;  %1560 = vset.pattern.permute.xlu1 %v1647_v18  ;;  %v1996_v38 = vrot.slane %v1881_v26, %v514_v19 }
  0x95   : > { %v465_v42 = vpop.permute.xlu0 %464  ;;  %v1921_v45 = vpop.permute.xlu1 %541  ;;  %v1999_v39 = vrot.slane %v1886_v27, %v514_v19 }
  0x96   : > { %v1917_v43 = vadd.f32 %v477_v40, %v410_v36  ;;  %v1919_v44 = vadd.f32 %v478_v41, %v411_v37 }
  0x97   : > { %785 = vrot.lane.b32.xlu1 %v1748_v5, %s1649_s14 }
  0x98   : > { %898 = vperm.xlu0 %1562, %v1734_v3  }
  0x99   : > { %v461_v46 = vpop.permute.xlu0 %460  ;;  %v417_v47 = vpop.permute.xlu1 %416 }
  0x9b   : > { %829 = vperm.xlu1 %1560, %v1722_v0  }
  0x9c   : > { %939 = vrot.lane.b32.xlu0 %v1753_v6, %s1652_s21 }
  0x9d   : > { %v415_v48 = vpop.permute.xlu0 %414  ;;  %v425_v49 = vpop.permute.xlu1 %424 }
  0x9e   : > { %v433_v59 = vsel %vm430_vm0, %v417_v47, %v425_v49  ;;  %v437_v62 = vsel %vm430_vm0, %v425_v49, %v417_v47  ;;  %v409_v47 = vmul.f32 %v1870_v22, %v1771_v10 }
  0x9f   : > { %633 = vrot.lane.b32.xlu1 %v1821_v16, %s1645_s11  ;;  %v451_v23 = vmul.f32 %v1896_v30, %v437_v62  ;;  %v452_v25 = vmul.f32 %v1899_v31, %v433_v59  ;;  %v998_v59 = vld [vmem:[%s2548_s2] sm:$0xff] }
  0xa0   : > { %779 = vrot.lane.b32.xlu0 %v1821_v16, %s1649_s14  ;;  %1563 = vset.pattern.permute.xlu1 %v1653_v51 }
  0xa1   : > { %v1933_v50 = vpop.permute.xlu0 %456  ;;  %v1936_v52 = vpop.permute.xlu1 %493  ;;  %v475_v36 = vmul.f32 %v465_v42, %v451_v23  ;;  %v476_v37 = vmul.f32 %v465_v42, %v452_v25  ;;  %v408_v42 = vmul.f32 %v1870_v22, %v1762_v8 }
  0xa3   : > { %641 = vrot.lane.b32.xlu1 %v1796_v14, %s1645_s11  ;;  %v484_v62 = vadd.f32 %v476_v37, %v409_v47 }
  0xa4   : > { %854 = vrot.lane.b32.xlu0 %v1768_v9, %s1651_s20 }
  0xa5   : > { %v1942_v53 = vpop.permute.xlu1 %501 }
  0xa6   : > { %v538_v54 = vpop.permute.xlu0 %537 }
  0xa7   : > { %716 = vrot.lane.b32.xlu1 %v1793_v13, %s1648_s12 }
  0xa8   : > { %894 = vperm.xlu0 %1562, %v1780_v12  }
  0xa9   : > { %v1947_v55 = vpop.permute.xlu1 %614 }
  0xaa   : > { %v1949_v56 = vpop.permute.xlu0 %533 }
  0xab   : > { %783 = vrot.lane.b32.xlu1 %v1762_v8, %s1649_s14 }
  0xac   : > { %937 = vrot.lane.b32.xlu0 %v1771_v10, %s1652_s21 }
  0xad   : > { %1566 = vset.pattern.permute.xlu0 %v1653_v51 }
  0xae   : > { %v1956_v57 = vpop.permute.xlu1 %386 }
  0xaf   : > { %v1958_v58 = vpop.permute.xlu0 %610  ;;  %791 = vrot.lane.b32.xlu1 %v1771_v10, %s1649_s14 }
  0xb0   : > { %927 = vrot.lane.b32.xlu0 %v1768_v9, %s1652_s21 }
  0xb2   : > { %v423_v60 = vpop.permute.xlu1 %422 }
  0xb3   : > { %v421_v61 = vpop.permute.xlu0 %420  ;;  %v432_v63 = vsel %vm430_vm0, %v415_v48, %v423_v60  ;;  %v436_v2 = vsel %vm430_vm0, %v423_v60, %v415_v48  ;;  %858 = vrot.lane.b32.xlu1 %v1748_v5, %s1651_s20  ;;  %v483_v60 = vadd.f32 %v475_v36, %v408_v42 }
  0xb4   : > { %967 = vperm.xlu0 %1566, %v1780_v12   ;;  %v449_v15 = vmul.f32 %v1896_v30, %v436_v2  ;;  %v450_v17 = vmul.f32 %v1899_v31, %v432_v63 }
  0xb6   : > { %v473_v28 = vmul.f32 %v461_v46, %v449_v15  ;;  %v474_v32 = vmul.f32 %v461_v46, %v450_v17  ;;  %v492_v33 = vpop.permute.xlu1 %491 }
  0xb7   : > { %v498_v34 = vpop.permute.xlu0 %497  ;;  %866 = vrot.lane.b32.xlu1 %v1753_v6, %s1651_s20 }
  0xb8   : > { %1567 = vset.pattern.permute.xlu0 %v1640_v7  ;;  %v1990_v29 = vadd.f32 %v473_v28, %v406_v4  ;;  %v1992_v35 = vadd.f32 %v474_v32, %v407_v11 }
  0xb9   : > { %1019 = vperm.xlu0 %1567, %v1001_v20  }
  0xba   : > { %v500_v40 = vpop.permute.xlu1 %499 }
  0xbb   : > { %v2001_v41 = vpop.permute.xlu0 %564  ;;  %v506_v6 = vsel %vm503_vm1, %v492_v33, %v500_v40  ;;  %v510_v46 = vsel %vm503_vm1, %v500_v40, %v492_v33  ;;  %979 = vperm.xlu1 %1563, %v1727_v1  }
  0xbc   : > { %v524_v48 = vmul.f32 %v1996_v38, %v510_v46  ;;  %v525_v49 = vmul.f32 %v1999_v39, %v506_v6 }
  0xbd   : > { %933 = vrot.lane.b32.xlu0 %v1796_v14, %s1652_s21 }
  0xbe   : > { %v548_v1 = vmul.f32 %v538_v54, %v524_v48  ;;  %v549_v63 = vmul.f32 %v538_v54, %v525_v49  ;;  %v567_v2 = vpop.permute.xlu1 %566 }
  0xbf   : > { %v2019_v4 = vpop.permute.xlu0 %606  ;;  %706 = vrot.lane.b32.xlu1 %v1821_v16, %s1648_s12 }
  0xc0   : > { %v2023_v22 = vadd.f32 %v548_v1, %v483_v60  ;;  %v2025_v11 = vadd.f32 %v549_v63, %v484_v62  ;;  %1564 = vset.pattern.permute.xlu1 %v1647_v18 }
  0xc1   : > { %1004 = vperm.xlu0 %1567, %v998_v59  }
  0xc2   : > { %v575_v15 = vpop.permute.xlu1 %574 }
  0xc3   : > { %v2028_v17 = vpop.permute.xlu0 %647  ;;  %781 = vrot.lane.b32.xlu1 %v1768_v9, %s1649_s14  ;;  %v584_v47 = vsel %vm576_vm2, %v575_v15, %v567_v2 }
  0xc6   : > { %v2032_v54 = vpop.permute.xlu1 %687 }
  0xc7   : > { %v2034_v19 = vpop.permute.xlu0 %562  ;;  %821 = vperm.xlu1 %1564, %v1780_v12   ;;  %v587_v12 = vsub.s32 2, %v1868_v21 }
  0xca   : > { %v413_v20 = vpop.permute.xlu1 %412 }
  0xcb   : > { %v2037_v23 = vpop.permute.xlu0 %602  ;;  %v431_v25 = vsel %vm430_vm0, %v413_v20, %v421_v61  ;;  %v435_v18 = vsel %vm430_vm0, %v421_v61, %v413_v20  ;;  %864 = vrot.lane.b32.xlu1 %v1771_v10, %s1651_s20 }
  0xcc   : > { %v447_v9 = vmul.f32 %v1896_v30, %v435_v18  ;;  %v448_v28 = vmul.f32 %v1899_v31, %v431_v25  ;;  %1565 = vset.pattern.permute.xlu1 %v1653_v51  ;;  %v511_v51 = vsel %vm503_vm1, %v1942_v53, %v1936_v52 }
  0xcd   : > { %v526_v42 = vmul.f32 %v1996_v38, %v511_v51 }
  0xce   : > { %v2050_v32 = vmul.f32 %v1933_v50, %v447_v9  ;;  %v2053_v33 = vmul.f32 %v1933_v50, %v448_v28  ;;  %v490_v36 = vpop.permute.xlu1 %489  ;;  %v507_v50 = vsel %vm503_vm1, %v1936_v52, %v1942_v53  ;;  %v580_v53 = vsel %vm576_vm2, %v567_v2, %v575_v15 }
  0xcf   : > { %v505_v10 = vsel %vm503_vm1, %v490_v36, %v498_v34  ;;  %v509_v30 = vsel %vm503_vm1, %v498_v34, %v490_v36  ;;  %931 = vrot.lane.b32.xlu1 %v1748_v5, %s1652_s21  ;;  %v2075_v34 = vrot.slane %v1881_v26, %v587_v12  ;;  %v2078_v5 = vrot.slane %v1886_v27, %v587_v12 }
  0xd0   : > { %v2062_v31 = vpop.permute.xlu0 %679  ;;  %v522_v61 = vmul.f32 %v1996_v38, %v509_v30  ;;  %v523_v37 = vmul.f32 %v1999_v39, %v505_v10  ;;  %v527_v52 = vmul.f32 %v1999_v39, %v507_v50  ;;  %v550_v63 = vmul.f32 %v1921_v45, %v526_v42 }
  0xd1   : > { %v599_v60 = vmul.f32 %v2075_v34, %v584_v47  ;;  %v600_v62 = vmul.f32 %v2078_v5, %v580_v53 }
  0xd2   : > { %v546_v40 = vmul.f32 %v1949_v56, %v522_v61  ;;  %v547_v6 = vmul.f32 %v1949_v56, %v523_v37  ;;  %v2082_v46 = vpop.permute.xlu1 %529  ;;  %v660_v56 = vsub.s32 3, %v1868_v21  ;;  %v558_v36 = vadd.f32 %v550_v63, %v1917_v43 }
  0xd3   : > { %975 = vperm.xlu1 %1565, %v1722_v0   ;;  %v551_v0 = vmul.f32 %v1921_v45, %v527_v52  ;;  %v623_v18 = vmul.f32 %v1947_v55, %v599_v60  ;;  %v624_v9 = vmul.f32 %v1947_v55, %v600_v62  ;;  %v405_v60 = vmul.f32 %v1956_v57, %v1796_v14 }
  0xd4   : > { %v2092_v48 = vadd.f32 %v546_v40, %v1990_v29  ;;  %v2095_v49 = vadd.f32 %v547_v6, %v1992_v35  ;;  %v2116_v20 = vrot.slane %v1881_v26, %v660_v56  ;;  %v2119_v45 = vrot.slane %v1886_v27, %v660_v56 }
  0xd5   : > { %v2098_v59 = vpop.permute.xlu0 %760  ;;  %v559_v10 = vadd.f32 %v551_v0, %v1919_v44  ;;  %v631_v61 = vadd.f32 %v623_v18, %v558_v36  ;;  %v480_v0 = vadd.f32 %v2053_v33, %v405_v60 }
  0xd6   : > { %v573_v1 = vpop.permute.xlu1 %572 }
  0xd7   : > { %v579_v29 = vsel %vm576_vm2, %v2001_v41, %v573_v1  ;;  %v583_v35 = vsel %vm576_vm2, %v573_v1, %v2001_v41  ;;  %787 = vrot.lane.b32.xlu1 %v1796_v14, %s1649_s14  ;;  %v632_v37 = vadd.f32 %v624_v9, %v559_v10 }
  0xd8   : > { %v597_v2 = vmul.f32 %v2075_v34, %v583_v35  ;;  %v598_v15 = vmul.f32 %v2078_v5, %v579_v29 }
  0xd9   : > { %v2121_v25 = vpop.permute.xlu0 %756 }
  0xda   : > { %v621_v41 = vmul.f32 %v1958_v58, %v597_v2  ;;  %v622_v28 = vmul.f32 %v1958_v58, %v598_v15  ;;  %v640_v12 = vpop.permute.xlu1 %639 }
  0xdb   : > { %v653_v30 = vsel %vm649_vm3, %v640_v12, %v2028_v17  ;;  %v657_v50 = vsel %vm649_vm3, %v2028_v17, %v640_v12  ;;  %862 = vrot.lane.b32.xlu1 %v1793_v13, %s1651_s20 }
  0xdc   : > { %v629_v55 = vadd.f32 %v621_v41, %v2023_v22  ;;  %v630_v58 = vadd.f32 %v622_v28, %v2025_v11  ;;  %v672_v51 = vmul.f32 %v2116_v20, %v657_v50  ;;  %v673_v43 = vmul.f32 %v2119_v45, %v653_v30  ;;  %v1000_v41 = vld [vmem:[%s2548_s2 + $0x10] sm:$0xff] }
  0xdd   : > { %v2141_v44 = vpop.permute.xlu0 %568 }
  0xde   : > { %v696_v40 = vmul.f32 %v2032_v54, %v672_v51  ;;  %v697_v6 = vmul.f32 %v2032_v54, %v673_v43  ;;  %v684_v17 = vpop.permute.xlu1 %683 }
  0xdf   : > { %929 = vrot.lane.b32.xlu1 %v1762_v8, %s1652_s21  ;;  %v404_v8 = vmul.f32 %v1956_v57, %v1821_v16 }
  0xe0   : > { %v2147_v42 = vadd.f32 %v696_v40, %v631_v61  ;;  %v2149_v22 = vadd.f32 %v697_v6, %v632_v37  ;;  %v999_v6 = vld [vmem:[%s2548_s2 + $0x8] sm:$0xff] }
  0xe1   : > { %v2151_v11 = vpop.permute.xlu0 %643  ;;  %v479_v63 = vadd.f32 %v2050_v32, %v404_v8 }
  0xe2   : > { %v488_v52 = vpop.permute.xlu1 %487 }
  0xe3   : > { %971 = vperm.xlu1 %1565, %v1734_v3  }
  0xe5   : > { %v2154_v53 = vpop.permute.xlu0 %710 }
  0xe6   : > { %v496_v47 = vpop.permute.xlu1 %495 }
  0xe7   : > { %v504_v56 = vsel %vm503_vm1, %v488_v52, %v496_v47  ;;  %v508_v54 = vsel %vm503_vm1, %v496_v47, %v488_v52  ;;  %852 = vrot.lane.b32.xlu1 %v1821_v16, %s1651_s20 }
  0xe8   : > { %v520_v3 = vmul.f32 %v1996_v38, %v508_v54  ;;  %v521_v62 = vmul.f32 %v1999_v39, %v504_v56  ;;  %1568 = vset.pattern.permute.xlu1 %v1640_v7 }
  0xe9   : > { %v2169_v1 = vpop.permute.xlu0 %752 }
  0xea   : > { %v544_v29 = vmul.f32 %v2082_v46, %v520_v3  ;;  %v545_v35 = vmul.f32 %v2082_v46, %v521_v62  ;;  %v571_v2 = vpop.permute.xlu1 %570 }
  0xeb   : > { %v578_v57 = vsel %vm576_vm2, %v2034_v19, %v571_v2  ;;  %v582_v38 = vsel %vm576_vm2, %v571_v2, %v2034_v19  ;;  %860 = vrot.lane.b32.xlu1 %v1796_v14, %s1651_s20 }
  0xec   : > { %v552_v7 = vadd.f32 %v544_v29, %v479_v63  ;;  %v553_v39 = vadd.f32 %v545_v35, %v480_v0  ;;  %v595_v32 = vmul.f32 %v2075_v34, %v582_v38  ;;  %v596_v33 = vmul.f32 %v2078_v5, %v578_v57 }
  0xed   : > { %v2185_v15 = vpop.permute.xlu0 %793 }
  0xee   : > { %v619_v46 = vmul.f32 %v2019_v4, %v595_v32  ;;  %v620_v18 = vmul.f32 %v2019_v4, %v596_v33  ;;  %v638_v9 = vpop.permute.xlu1 %637 }
  0xef   : > { %935 = vrot.lane.b32.xlu1 %v1793_v13, %s1652_s21 }
  0xf0   : > { %v627_v19 = vadd.f32 %v619_v46, %v2092_v48  ;;  %v628_v14 = vadd.f32 %v620_v18, %v2095_v49  ;;  %v733_v49 = vsub.s32 5, %v1868_v21 }
  0xf1   : > { %v2196_v28 = vpop.permute.xlu0 %708 }
  0xf2   : > { %v646_v12 = vpop.permute.xlu1 %645  ;;  %v2211_v37 = vrot.slane %v1881_v26, %v733_v49  ;;  %v2214_v40 = vrot.slane %v1886_v27, %v733_v49 }
  0xf3   : > { %v652_v36 = vsel %vm649_vm3, %v638_v9, %v646_v12  ;;  %v656_v4 = vsel %vm649_vm3, %v646_v12, %v638_v9  ;;  %1014 = vperm.xlu1 %1568, %v1000_v41   ;;  %v806_v12 = vsub.s32 6, %v1868_v21 }
  0xf4   : > { %v670_v13 = vmul.f32 %v2116_v20, %v656_v4  ;;  %v671_v48 = vmul.f32 %v2119_v45, %v652_v36 }
  0xf5   : > { %v2208_v51 = vpop.permute.xlu0 %748 }
  0xf6   : > { %v694_v10 = vmul.f32 %v684_v17, %v670_v13  ;;  %v695_v30 = vmul.f32 %v684_v17, %v671_v48  ;;  %v713_v50 = vpop.permute.xlu1 %712 }
  0xf7   : > { %925 = vrot.lane.b32.xlu1 %v1821_v16, %s1652_s21 }
  0xf8   : > { %v702_v43 = vadd.f32 %v694_v10, %v629_v55  ;;  %v703_v61 = vadd.f32 %v695_v30, %v630_v58 }
  0xfa   : > { %v721_v17 = vpop.permute.xlu1 %720  ;;  %v2225_v47 = vpop.permute.xlu0 %825 }
  0xfb   : > { %v726_v16 = vsel %vm722_vm4, %v713_v50, %v721_v17  ;;  %v730_v52 = vsel %vm722_vm4, %v721_v17, %v713_v50  ;;  %1009 = vperm.xlu1 %1568, %v999_v6  }
  0xfc   : > { %v745_v55 = vmul.f32 %v2211_v37, %v726_v16  ;;  %v746_v58 = vmul.f32 %v2214_v40, %v730_v52 }
  0xfe   : > { %v769_v56 = vmul.f32 %v2098_v59, %v745_v55  ;;  %v770_v54 = vmul.f32 %v2098_v59, %v746_v58  ;;  %v834_v8 = vpop.permute.xlu1 %833 }
  0xff   : > { %v2237_v29 = vpop.permute.xlu0 %906 }
 0x100   : > { %v777_v60 = vadd.f32 %v769_v56, %v2147_v42  ;;  %v778_v3 = vadd.f32 %v770_v54, %v2149_v22 }
 0x102   : > { %v561_v62 = vpop.permute.xlu1 %560 }
 0x103   : > { %v577_v63 = vsel %vm576_vm2, %v561_v62, %v2141_v44  ;;  %v581_v0 = vsel %vm576_vm2, %v2141_v44, %v561_v62 }
 0x104   : > { %v593_v35 = vmul.f32 %v2075_v34, %v581_v0  ;;  %v594_v59 = vmul.f32 %v2078_v5, %v577_v63  ;;  %v2251_v5 = vpop.permute.xlu0 %902 }
 0x106   : > { %v617_v2 = vmul.f32 %v2037_v23, %v593_v35  ;;  %v618_v42 = vmul.f32 %v2037_v23, %v594_v59  ;;  %v636_v22 = vpop.permute.xlu1 %635 }
 0x107   : > { %v651_v57 = vsel %vm649_vm3, %v636_v22, %v2151_v11  ;;  %v655_v38 = vsel %vm649_vm3, %v2151_v11, %v636_v22 }
 0x108   : > { %v625_v44 = vadd.f32 %v617_v2, %v552_v7  ;;  %v626_v32 = vadd.f32 %v618_v42, %v553_v39  ;;  %v668_v33 = vmul.f32 %v2116_v20, %v655_v38  ;;  %v669_v34 = vmul.f32 %v2119_v45, %v651_v57  ;;  %v715_v39 = vpop.permute.xlu0 %714 }
 0x10a   : > { %v692_v46 = vmul.f32 %v2062_v31, %v668_v33  ;;  %v693_v23 = vmul.f32 %v2062_v31, %v669_v34  ;;  %v676_v18 = vpop.permute.xlu1 %675 }
 0x10c   : > { %v700_v9 = vadd.f32 %v692_v46, %v627_v19  ;;  %v701_v41 = vadd.f32 %v693_v23, %v628_v14  ;;  %v2266_v19 = vrot.slane %v1881_v26, %v806_v12  ;;  %v2269_v14 = vrot.slane %v1886_v27, %v806_v12  ;;  %v790_v16 = vpop.permute.xlu0 %789 }
 0x10e   : > { %v719_v36 = vpop.permute.xlu1 %718 }
 0x10f   : > { %v725_v11 = vsel %vm722_vm4, %v2154_v53, %v719_v36  ;;  %v729_v7 = vsel %vm722_vm4, %v719_v36, %v2154_v53 }
 0x110   : > { %v743_v4 = vmul.f32 %v2211_v37, %v725_v11  ;;  %v744_v31 = vmul.f32 %v2214_v40, %v729_v7  ;;  %v2285_v62 = vpop.permute.xlu0 %856 }
 0x112   : > { %v767_v13 = vmul.f32 %v2121_v25, %v743_v4  ;;  %v768_v48 = vmul.f32 %v2121_v25, %v744_v31  ;;  %v786_v49 = vpop.permute.xlu1 %785 }
 0x113   : > { %v799_v53 = vsel %vm795_vm5, %v786_v49, %v2185_v15  ;;  %v803_v10 = vsel %vm795_vm5, %v2185_v15, %v786_v49 }
 0x114   : > { %v775_v30 = vadd.f32 %v767_v13, %v702_v43  ;;  %v776_v50 = vadd.f32 %v768_v48, %v703_v61  ;;  %v818_v6 = vmul.f32 %v2266_v19, %v799_v53  ;;  %v819_v17 = vmul.f32 %v2269_v14, %v803_v10 }
 0x116   : > { %v842_v52 = vmul.f32 %v834_v8, %v818_v6  ;;  %v843_v55 = vmul.f32 %v834_v8, %v819_v17  ;;  %v830_v58 = vpop.permute.xlu1 %829  ;;  %v2293_v8 = vpop.permute.xlu0 %898 }
 0x118   : > { %v2281_v25 = vadd.f32 %v842_v52, %v777_v60  ;;  %v2283_v56 = vadd.f32 %v843_v55, %v778_v3 }
 0x11a   : > { %v634_v54 = vpop.permute.xlu1 %633  ;;  %v940_v34 = vpop.permute.xlu0 %939 }
 0x11e   : > { %v642_v63 = vpop.permute.xlu1 %641  ;;  %v2311_v36 = vpop.permute.xlu0 %779 }
 0x11f   : > { %v650_v15 = vsel %vm649_vm3, %v634_v54, %v642_v63  ;;  %v654_v43 = vsel %vm649_vm3, %v642_v63, %v634_v54 }
 0x120   : > { %v666_v61 = vmul.f32 %v2116_v20, %v654_v43  ;;  %v667_v0 = vmul.f32 %v2119_v45, %v650_v15 }
 0x122   : > { %v690_v60 = vmul.f32 %v676_v18, %v666_v61  ;;  %v691_v35 = vmul.f32 %v676_v18, %v667_v0  ;;  %v717_v3 = vpop.permute.xlu1 %716  ;;  %v2317_v31 = vpop.permute.xlu0 %854 }
 0x123   : > { %v724_v59 = vsel %vm722_vm4, %v2196_v28, %v717_v3  ;;  %v728_v2 = vsel %vm722_vm4, %v717_v3, %v2196_v28 }
 0x124   : > { %v698_v42 = vadd.f32 %v690_v60, %v625_v44  ;;  %v699_v22 = vadd.f32 %v691_v35, %v626_v32  ;;  %v741_v57 = vmul.f32 %v2211_v37, %v724_v59  ;;  %v742_v20 = vmul.f32 %v2214_v40, %v728_v2 }
 0x126   : > { %v765_v45 = vmul.f32 %v2169_v1, %v741_v57  ;;  %v766_v38 = vmul.f32 %v2169_v1, %v742_v20  ;;  %v784_v33 = vpop.permute.xlu1 %783  ;;  %v2319_v48 = vpop.permute.xlu0 %894 }
 0x128   : > { %v773_v46 = vadd.f32 %v765_v45, %v700_v9  ;;  %v774_v23 = vadd.f32 %v766_v38, %v701_v41 }
 0x12a   : > { %v792_v18 = vpop.permute.xlu1 %791  ;;  %v938_v17 = vpop.permute.xlu0 %937 }
 0x12b   : > { %v798_v12 = vsel %vm795_vm5, %v784_v33, %v792_v18  ;;  %v802_v28 = vsel %vm795_vm5, %v792_v18, %v784_v33 }
 0x12c   : > { %v816_v44 = vmul.f32 %v2266_v19, %v798_v12  ;;  %v817_v32 = vmul.f32 %v2269_v14, %v802_v28 }
 0x12e   : > { %v840_v11 = vmul.f32 %v830_v58, %v816_v44  ;;  %v841_v7 = vmul.f32 %v830_v58, %v817_v32  ;;  %v859_v1 = vpop.permute.xlu1 %858  ;;  %v2355_v35 = vpop.permute.xlu0 %927 }
 0x130   : > { %v2313_v4 = vadd.f32 %v840_v11, %v775_v30  ;;  %v2315_v9 = vadd.f32 %v841_v7, %v776_v50  ;;  %v879_v50 = vsub.s32 7, %v1868_v21 }
 0x132   : > { %v867_v41 = vpop.permute.xlu1 %866  ;;  %v2342_v15 = vrot.slane %v1881_v26, %v879_v50 }
 0x133   : > { %v876_v60 = vsel %vm868_vm6, %v867_v41, %v859_v1 }
 0x136   : > { %v980_v13 = vpop.permute.xlu1 %979 }
 0x13a   : > { %v707_v49 = vpop.permute.xlu1 %706 }
 0x13b   : > { %v723_v53 = vsel %vm722_vm4, %v707_v49, %v715_v39  ;;  %v727_v10 = vsel %vm722_vm4, %v715_v39, %v707_v49 }
 0x13c   : > { %v739_v6 = vmul.f32 %v2211_v37, %v723_v53  ;;  %v740_v30 = vmul.f32 %v2214_v40, %v727_v10 }
 0x13e   : > { %v763_v52 = vmul.f32 %v2208_v51, %v739_v6  ;;  %v764_v55 = vmul.f32 %v2208_v51, %v740_v30  ;;  %v782_v58 = vpop.permute.xlu1 %781  ;;  %v2345_v51 = vrot.slane %v1886_v27, %v879_v50 }
 0x13f   : > { %v797_v54 = vsel %vm795_vm5, %v782_v58, %v790_v16  ;;  %v801_v39 = vsel %vm795_vm5, %v790_v16, %v782_v58  ;;  %v872_v16 = vsel %vm868_vm6, %v859_v1, %v867_v41 }
 0x140   : > { %v2335_v63 = vadd.f32 %v763_v52, %v698_v42  ;;  %v2337_v37 = vadd.f32 %v764_v55, %v699_v22  ;;  %v814_v40 = vmul.f32 %v2266_v19, %v797_v54  ;;  %v815_v21 = vmul.f32 %v2269_v14, %v801_v39  ;;  %v2372_v42 = vld [vmem:[%s2549_s3 + $0x18] ss:$0 sm:$0xff]  ;;  %v2374_v22 = vpop.permute.xlu0 %967 }
 0x141   : > { %v891_v27 = vmul.f32 %v2342_v15, %v872_v16  ;;  %v892_v59 = vmul.f32 %v2345_v51, %v876_v60 }
 0x142   : > { %v838_v43 = vmul.f32 %v2225_v47, %v814_v40  ;;  %v839_v61 = vmul.f32 %v2225_v47, %v815_v21  ;;  %v2349_v0 = vpop.permute.xlu1 %821  ;;  %v2367_v47 = vld [vmem:[%s2549_s3 + $0x10] ss:$0 sm:$0xff] }
 0x143   : > { %v915_v57 = vmul.f32 %v2237_v29, %v891_v27  ;;  %v916_v20 = vmul.f32 %v2237_v29, %v892_v59 }
 0x144   : > { %v2357_v3 = vadd.f32 %v838_v43, %v773_v46  ;;  %v2359_v26 = vadd.f32 %v839_v61, %v774_v23  ;;  %v1020_v11 = vpop.permute.xlu0 %1019 }
 0x145   : > { %v923_v44 = vadd.f32 %v915_v57, %v2281_v25  ;;  %v924_v32 = vadd.f32 %v916_v20, %v2283_v56 }
 0x146   : > { %v865_v2 = vpop.permute.xlu1 %864 }
 0x147   : > { %v871_v25 = vsel %vm868_vm6, %v2285_v62, %v865_v2  ;;  %v875_v6 = vsel %vm868_vm6, %v865_v2, %v2285_v62 }
 0x148   : > { %v889_v30 = vmul.f32 %v2342_v15, %v871_v25  ;;  %v890_v50 = vmul.f32 %v2345_v51, %v875_v6 }
 0x14a   : > { %v932_v45 = vpop.permute.xlu1 %931  ;;  %v913_v40 = vmul.f32 %v2251_v5, %v889_v30  ;;  %v914_v60 = vmul.f32 %v2251_v5, %v890_v50  ;;  %v934_v50 = vpop.permute.xlu0 %933 }
 0x14b   : > { %v945_v38 = vsel %vm941_vm7, %v932_v45, %v940_v34  ;;  %v949_v33 = vsel %vm941_vm7, %v940_v34, %v932_v45 }
 0x14c   : > { %v964_v46 = vmul.f32 %v2367_v47, %v945_v38  ;;  %v965_v23 = vmul.f32 %v2372_v42, %v949_v33  ;;  %v921_v5 = vadd.f32 %v913_v40, %v2313_v4 }
 0x14e   : > { %v988_v18 = vmul.f32 %v980_v13, %v964_v46  ;;  %v989_v12 = vmul.f32 %v980_v13, %v965_v23  ;;  %v976_v28 = vpop.permute.xlu1 %975  ;;  %v922_v23 = vadd.f32 %v914_v60, %v2315_v9 }
 0x150   : > { %v996_v29 = vadd.f32 %v988_v18, %v923_v44  ;;  %v997_v7 = vadd.f32 %v989_v12, %v924_v32 }
 0x152   : > { %v2386_v1 = vadd.f32 %v1020_v11, %v996_v29  ;;  %v2388_v41 = vadd.f32 %v1020_v11, %v997_v7  ;;  %v788_v49 = vpop.permute.xlu1 %787 }
 0x153   : > { %v796_v62 = vsel %vm795_vm5, %v2311_v36, %v788_v49 }
 0x154   : > { %v1471_v34 = vmul.f32 -1.442695, %v2386_v1  ;;  %v1472_v53 = vmul.f32 -1.442695, %v2388_v41  ;;  %v812_v57 = vmul.f32 %v2266_v19, %v796_v62 }
 0x156   : > { %1569 = vpow2.f32 %v1471_v34  ;;  %v863_v10 = vpop.permute.xlu1 %862  ;;  %v836_v4 = vmul.f32 %v2349_v0, %v812_v57 }
 0x157   : > { %1571 = vpow2.f32 %v1472_v53  ;;  %v870_v59 = vsel %vm868_vm6, %v2317_v31, %v863_v10  ;;  %v874_v2 = vsel %vm868_vm6, %v863_v10, %v2317_v31 }
 0x158   : > { %v887_v33 = vmul.f32 %v2342_v15, %v870_v59  ;;  %v844_v10 = vadd.f32 %v836_v4, %v2335_v63  ;;  %v1005_v59 = vpop.permute.xlu0 %1004 }
 0x15a   : > { %v930_v13 = vpop.permute.xlu1 %929  ;;  %v911_v11 = vmul.f32 %v2293_v8, %v887_v33  ;;  %v1654_v33 = vmov 0.0  }
 0x15b   : > { %v944_v52 = vsel %vm941_vm7, %v930_v13, %v938_v17  ;;  %v948_v55 = vsel %vm941_vm7, %v938_v17, %v930_v13  ;;  %v800_v17 = vsel %vm795_vm5, %v788_v49, %v2311_v36  ;;  %v888_v36 = vmul.f32 %v2345_v51, %v874_v2  ;;  %1499 = vmatprep.subr.mxu0 %v1654_v33 }
 0x15c   : > { %v962_v61 = vmul.f32 %v2367_v47, %v944_v52  ;;  %v963_v16 = vmul.f32 %v2372_v42, %v948_v55  ;;  %v813_v38 = vmul.f32 %v2269_v14, %v800_v17  ;;  %v919_v52 = vadd.f32 %v911_v11, %v2357_v3  ;;  %1507 = vmatprep.mubr.msk.f32.mxu0 %vm1655_vm8, %v1654_v33 }
 0x15d   : > { %v912_v34 = vmul.f32 %v2293_v8, %v888_v36 }
 0x15e   : > { %v972_v56 = vpop.permute.xlu1 %971  ;;  %v986_v20 = vmul.f32 %v976_v28, %v962_v61  ;;  %v987_v45 = vmul.f32 %v976_v28, %v963_v16  ;;  %v837_v32 = vmul.f32 %v2349_v0, %v813_v38 }
 0x160   : > { %v994_v28 = vadd.f32 %v986_v20, %v921_v5  ;;  %v995_v44 = vadd.f32 %v987_v45, %v922_v23  ;;  %v845_v30 = vadd.f32 %v837_v32, %v2337_v37 }
 0x162   : > { %v853_v58 = vpop.permute.xlu1 %852 }
 0x163   : > { %v1570_v54 = vpop.eup %1569 }
 0x164   : > { %v1572_v39 = vpop.eup %1571  ;;  %v1060_v21 = vadd.f32 1.0, %v1570_v54 }
 0x165   : > { %v1061_v43 = vadd.f32 1.0, %v1572_v39 }
 0x166   : > { %1573 = vrcp.f32 %v1060_v21  ;;  %v861_v27 = vpop.permute.xlu1 %860 }
 0x167   : > { %1575 = vrcp.f32 %v1061_v43  ;;  %v869_v18 = vsel %vm868_vm6, %v853_v58, %v861_v27  ;;  %v873_v31 = vsel %vm868_vm6, %v861_v27, %v853_v58  ;;  %v920_v58 = vadd.f32 %v912_v34, %v2359_v26 }
 0x168   : > { %v885_v29 = vmul.f32 %v2342_v15, %v869_v18  ;;  %v886_v7 = vmul.f32 %v2345_v51, %v873_v31 }
 0x16a   : > { %v936_v46 = vpop.permute.xlu1 %935  ;;  %v909_v15 = vmul.f32 %v2319_v48, %v885_v29  ;;  %v910_v51 = vmul.f32 %v2319_v48, %v886_v7 }
 0x16b   : > { %v943_v19 = vsel %vm941_vm7, %v2355_v35, %v936_v46  ;;  %v947_v14 = vsel %vm941_vm7, %v936_v46, %v2355_v35 }
 0x16c   : > { %v960_v12 = vmul.f32 %v2367_v47, %v943_v19  ;;  %v961_v9 = vmul.f32 %v2372_v42, %v947_v14  ;;  %v917_v43 = vadd.f32 %v909_v15, %v844_v10  ;;  %v918_v62 = vadd.f32 %v910_v51, %v845_v30  ;;  %v1104_v51 = vld [vmem:[%s2550_s4 + $0x10] sm:$0xff] }
 0x16e   : > { %v1015_v49 = vpop.permute.xlu1 %1014  ;;  %v984_v13 = vmul.f32 %v972_v56, %v960_v12  ;;  %v985_v25 = vmul.f32 %v972_v56, %v961_v9 }
 0x16f   : > { %v2444_v35 = vadd.f32 %v1015_v49, %v994_v28  ;;  %v2446_v53 = vadd.f32 %v1015_v49, %v995_v44 }
 0x170   : > { %v992_v40 = vadd.f32 %v984_v13, %v919_v52  ;;  %v993_v21 = vadd.f32 %v985_v25, %v920_v58 }
 0x171   : > { %v1469_v6 = vmul.f32 -1.442695, %v2444_v35  ;;  %v1470_v0 = vmul.f32 -1.442695, %v2446_v53 }
 0x172   : > { %v926_v8 = vpop.permute.xlu1 %925 }
 0x173   : > { %v1574_v55 = vpop.eup %1573  ;;  %1577 = vpow2.f32 %v1469_v6  ;;  %v942_v63 = vsel %vm941_vm7, %v926_v8, %v934_v50  ;;  %v946_v56 = vsel %vm941_vm7, %v934_v50, %v926_v8 }
 0x174   : > { %v1576_v54 = vpop.eup %1575  ;;  %v1084_v37 = vmul.f32 %v1574_v55, %v2386_v1  ;;  %1579 = vpow2.f32 %v1470_v0  ;;  %v958_v48 = vmul.f32 %v2367_v47, %v942_v63  ;;  %v959_v39 = vmul.f32 %v2372_v42, %v946_v56  ;;  %v1103_v55 = vld [vmem:[%s2550_s4 + $0x8] sm:$0xff] }
 0x175   : > { %v1085_v3 = vmul.f32 %v1576_v54, %v2388_v41  ;;  %v1102_v54 = vld [vmem:[%s2550_s4] sm:$0xff] }
 0x176   : > { %v982_v61 = vmul.f32 %v2374_v22, %v958_v48  ;;  %v983_v24 = vmul.f32 %v2374_v22, %v959_v39  ;;  %v1010_v16 = vpop.permute.xlu1 %1009 }
 0x177   : > { %v1024_v26 = vadd.f32 %v1010_v16, %v992_v40  ;;  %v1025_v60 = vadd.f32 %v1010_v16, %v993_v21  ;;  %v1095_v27 = vadd.f32 %v1085_v3, %v1084_v37  ;;  %v1110_v3 = vld [vmem:[%s2554_s8] sm:$0x3] }
 0x178   : > { %v990_v1 = vadd.f32 %v982_v61, %v917_v43  ;;  %v991_v17 = vadd.f32 %v983_v24, %v918_v62  ;;  %v1199_v40 = vld [vmem:[%s2555_s9] sm:$0xff] }
 0x179   : > { %v1467_v47 = vmul.f32 -1.442695, %v1024_v26  ;;  %v1468_v2 = vmul.f32 -1.442695, %v1025_v60  ;;  %1096 = vadd.xlane.f32.xlu1 %v1095_v27  ;;  %1512 = vmatprep.mubr.msk.f32.mxu1 %vm1203_vm10, %v1199_v40  ;;  %v1473_v21 = vld [vmem:[%s2551_s5] ss:$0 sm:$0xff] }
 0x17a   : > { %v1022_v42 = vadd.f32 %v1005_v59, %v990_v1  ;;  %v1023_v41 = vadd.f32 %v1005_v59, %v991_v17  ;;  %v1200_v1 = vld [vmem:[%s2555_s9 + $0x8] sm:$0xff]  ;;  %v1201_v17 = vld [vmem:[%s2555_s9 + $0x10] sm:$0xff]  ;;  %v1202_v59 = vld [vmem:[%s2555_s9 + $0x18] sm:$0xff] }
 0x17b   : > { %1581 = vpow2.f32 %v1467_v47  ;;  %v1306_v47 = vld [vmem:[%s2552_s6 + $0x8] sm:$0xff] }
 0x17c   : > { %1583 = vpow2.f32 %v1468_v2  ;;  %v1465_v57 = vmul.f32 -1.442695, %v1022_v42  ;;  %v1466_v20 = vmul.f32 -1.442695, %v1023_v41 }
 0x17e   : > { %1585 = vpow2.f32 %v1465_v57 }
 0x17f   : > { %1587 = vpow2.f32 %v1466_v20  ;;  %v1308_v20 = vld [vmem:[%s2552_s6 + $0x18] sm:$0xff] }
 0x180   : > { %v1578_v45 = vpop.eup %1577 }
 0x181   : > { %v1580_v22 = vpop.eup %1579  ;;  %v1058_v5 = vadd.f32 1.0, %v1578_v45 }
 0x182   : > { %v1059_v38 = vadd.f32 1.0, %v1580_v22 }
 0x183   : > { %1589 = vrcp.f32 %v1058_v5 }
 0x184   : > { %1591 = vrcp.f32 %v1059_v38  ;;  %v1307_v38 = vld [vmem:[%s2552_s6 + $0x10] sm:$0xff] }
 0x188   : > { %v1582_v36 = vpop.eup %1581 }
 0x189   : > { %v1584_v46 = vpop.eup %1583  ;;  %v1056_v23 = vadd.f32 1.0, %v1582_v36 }
 0x18a   : > { %v1057_v18 = vadd.f32 1.0, %v1584_v46 }
 0x18b   : > { %v1586_v31 = vpop.eup %1585  ;;  %1593 = vrcp.f32 %v1056_v23 }
 0x18c   : > { %v1588_v19 = vpop.eup %1587  ;;  %1595 = vrcp.f32 %v1057_v18  ;;  %v1054_v14 = vadd.f32 1.0, %v1586_v31 }
 0x18d   : > { %v1055_v4 = vadd.f32 1.0, %v1588_v19  ;;  %v1327_v19 = vld [vmem:[%s2553_s7 + $0x8] sm:$0xff] }
 0x18e   : > { %1597 = vrcp.f32 %v1054_v14 }
 0x18f   : > { %1599 = vrcp.f32 %v1055_v4  ;;  %v1326_v4 = vld [vmem:[%s2553_s7] sm:$0xff] }
 0x190   : > { %v1590_v12 = vpop.eup %1589 }
 0x191   : > { %v1592_v9 = vpop.eup %1591  ;;  %v1082_v28 = vmul.f32 %v1590_v12, %v2444_v35  ;;  %v1105_v35 = vld [vmem:[%s2550_s4 + $0x18] sm:$0xff] }
 0x192   : > { %v1083_v44 = vmul.f32 %v1592_v9, %v2446_v53 }
 0x194   : > { %v1092_v32 = vadd.f32 %v1083_v44, %v1082_v28  ;;  %v1329_v28 = vld [vmem:[%s2553_s7 + $0x18] sm:$0xff] }
 0x196   : > { %1093 = vadd.xlane.f32.xlu0 %v1092_v32 }
 0x198   : > { %v1594_v11 = vpop.eup %1593 }
 0x199   : > { %v1596_v29 = vpop.eup %1595  ;;  %v1080_v7 = vmul.f32 %v1594_v11, %v1024_v26 }
 0x19a   : > { %v1081_v49 = vmul.f32 %v1596_v29, %v1025_v60  ;;  %v1328_v29 = vld [vmem:[%s2553_s7 + $0x10] sm:$0xff] }
 0x19b   : > { %v1598_v34 = vpop.eup %1597 }
 0x19c   : > { %v1600_v10 = vpop.eup %1599  ;;  %v1089_v13 = vadd.f32 %v1081_v49, %v1080_v7  ;;  %v1078_v25 = vmul.f32 %v1598_v34, %v1022_v42  ;;  %v1305_v42 = vld [vmem:[%s2552_s6] sm:$0xff] }
 0x19d   : > { %v1079_v6 = vmul.f32 %v1600_v10, %v1023_v41 }
 0x19e   : > { %1090 = vadd.xlane.f32.xlu1 %v1089_v13 }
 0x19f   : > { %v1086_v0 = vadd.f32 %v1079_v6, %v1078_v25 }
 0x1a1   : > { %1087 = vadd.xlane.f32.xlu0 %v1086_v0 }
 0x202   : > { %v1097_v30 = vpop.xlane.xlu1 %1096 }
 0x203   : > { %v1101_v53 = vmul.f32 0.00390625, %v1097_v30 }
 0x205   : > { %v1109_v15 = vmul.f32 %v1105_v35, %v1101_v53 }
 0x207   : > { %1500 = vmatpush3.msra.mxu0 %v1109_v15 }
 0x208   : > { %1501 = vmatprep.subr.mxu0 %v1654_v33 }
 0x21f   : > { %v1094_v50 = vpop.xlane.xlu0 %1093 }
 0x220   : > { %v1100_v8 = vmul.f32 0.00390625, %v1094_v50 }
 0x222   : > { %v1108_v52 = vmul.f32 %v1104_v51, %v1100_v8 }
 0x224   : > { %1502 = vmatpush3.msra.mxu0 %v1108_v52 }
 0x225   : > { %1503 = vmatprep.subr.mxu0 %v1654_v33 }
 0x227   : > { %v1091_v63 = vpop.xlane.xlu1 %1090 }
 0x228   : > { %v1099_v56 = vmul.f32 0.00390625, %v1091_v63 }
 0x22a   : > { %v1107_v58 = vmul.f32 %v1103_v55, %v1099_v56  ;;  %v1088_v37 = vpop.xlane.xlu0 %1087 }
 0x22b   : > { %v1098_v48 = vmul.f32 0.00390625, %v1088_v37  ;;  %v1622_v37 = vld [vmem:[%s1745_s25 + $0x18] sm:$0xff] }
 0x22c   : > { %1504 = vmatpush3.msra.mxu0 %v1107_v58  ;;  %v1621_v58 = vld [vmem:[%s1745_s25 + $0x10] sm:$0xff] }
 0x22d   : > { %v1106_v39 = vmul.f32 %v1102_v54, %v1098_v48  ;;  %1505 = vmatprep.subr.mxu0 %v1654_v33 }
 0x22f   : > { %1506 = vmatpush3.msra.mxu0 %v1106_v39 }
 0x230   : > { %1508 = vmatmul.mubr.msk.f32.vlgmr.msra.gmra.mxu0 %vm1118_vm9, %v1110_v3  ;;  %v1623_v3 = vld [vmem:[%s1745_s25] sm:$0xff] }
 0x2f0   : > { %v1188_v43 = vpop.f32.mrf.mxu0 }
 0x2f1   : > { %v1189_v62 = vadd.f32 %v1473_v21, %v1188_v43  ;;  %v1624_v21 = vld [vmem:[%s1745_s25 + $0x8] sm:$0xff] }
 0x2f2   : > { %v1509_v61 = vpop.f32.mrf.mxu0 }
 0x2f3   : > { %v1475_v24 = vmul.f32 -1.442695, %v1189_v62  ;;  %v1625_v61 = vld [vmem:[%s1745_s25 + $0x20] sm:$0xff] }
 0x2f5   : > { %1601 = vpow2.f32 %v1475_v24 }
 0x302   : > { %v1602_v16 = vpop.eup %1601 }
 0x303   : > { %v1195_v26 = vadd.f32 1.0, %v1602_v16  ;;  %v1626_v16 = vld [vmem:[%s1745_s25 + $0x28] sm:$0xff] }
 0x305   : > { %1603 = vrcp.f32 %v1195_v26 }
 0x312   : > { %v1604_v60 = vpop.eup %1603 }
 0x313   : > { %v1198_v27 = vmul.f32 %v1604_v60, %v1189_v62 }
 0x315   : > { %1510 = vmatprep.subr.msk.mxu1 %vm1216_vm11, %v1198_v27 }
 0x316   : > { %1511 = vmatpush3.msk.msra.mxu1 %vm1216_vm11, %v1198_v27  ;;  %v1627_v27 = vld [vmem:[%s1745_s25 + $0x30] sm:$0xff] }
 0x317   : > { %1513 = vmatmul.mubr.msk.f32.vlgmr.msra.gmra.mxu1 %vm1203_vm10, %v1200_v1 }
 0x318   : > { %1515 = vmatprep.mubr.msk.f32.mxu1 %vm1203_vm10, %v1201_v17  ;;  %v1628_v17 = vld [vmem:[%s1745_s25 + $0x38] sm:$0xff] }
 0x31b   : > { %1516 = vmatmul.mubr.msk.f32.gmra.mxu1 %vm1203_vm10, %v1202_v59 }
 0x3d7   : > { %v1514_v2 = vpop.f32.mrf.mxu1 }
 0x3d8   : > { %v1310_v41 = vmul.f32 %v1514_v2, %v1306_v47 }
 0x3d9   : > { %v1286_v57 = vpop.f32.mrf.mxu1 }
 0x3da   : > { %v1309_v45 = vmul.f32 %v1305_v42, %v1286_v57  ;;  %v1317_v22 = vsel %vm1313_vm12, %v1310_v41, 0.0 }
 0x3db   : > { %1318 = vadd.xlane.f32.xlu0 %v1317_v22  ;;  %v1517_v5 = vpop.f32.mrf.mxu1 }
 0x3dc   : > { %v1312_v33 = vmul.f32 %v1517_v5, %v1308_v20  ;;  %v1314_v36 = vsel %vm1313_vm12, %v1309_v45, 0.0 }
 0x3dd   : > { %1315 = vadd.xlane.f32.xlu1 %v1314_v36  ;;  %v1296_v46 = vpop.f32.mrf.mxu1 }
 0x3de   : > { %v1311_v23 = vmul.f32 %v1307_v38, %v1296_v46  ;;  %v1323_v18 = vsel %vm1313_vm12, %v1312_v33, 0.0 }
 0x3df   : > { %1324 = vadd.xlane.f32.xlu0 %v1323_v18 }
 0x3e0   : > { %v1320_v31 = vsel %vm1313_vm12, %v1311_v23, 0.0 }
 0x3e1   : > { %1321 = vadd.xlane.f32.xlu1 %v1320_v31 }
 0x464   : > { %v1319_v14 = vpop.xlane.xlu0 %1318 }
 0x465   : > { %v1331_v12 = vadd.f32 %v1327_v19, %v1319_v14 }
 0x466   : > { %v1316_v9 = vpop.xlane.xlu1 %1315 }
 0x467   : > { %v1482_v44 = vmul.f32 -1.442695, %v1331_v12  ;;  %v1330_v32 = vadd.f32 %v1326_v4, %v1316_v9 }
 0x468   : > { %v1325_v11 = vpop.xlane.xlu0 %1324 }
 0x469   : > { %1605 = vpow2.f32 %v1482_v44  ;;  %v1481_v7 = vmul.f32 -1.442695, %v1330_v32  ;;  %v1333_v49 = vadd.f32 %v1329_v28, %v1325_v11 }
 0x46a   : > { %v1322_v34 = vpop.xlane.xlu1 %1321 }
 0x46b   : > { %1607 = vpow2.f32 %v1481_v7  ;;  %v1484_v10 = vmul.f32 -1.442695, %v1333_v49  ;;  %v1332_v13 = vadd.f32 %v1328_v29, %v1322_v34 }
 0x46d   : > { %v1483_v25 = vmul.f32 -1.442695, %v1332_v13  ;;  %1609 = vpow2.f32 %v1484_v10 }
 0x46f   : > { %1611 = vpow2.f32 %v1483_v25 }
 0x476   : > { %v1606_v6 = vpop.eup %1605 }
 0x477   : > { %v1347_v0 = vadd.f32 1.0, %v1606_v6 }
 0x478   : > { %v1608_v30 = vpop.eup %1607 }
 0x479   : > { %1613 = vrcp.f32 %v1347_v0  ;;  %v1346_v35 = vadd.f32 1.0, %v1608_v30 }
 0x47a   : > { %v1610_v53 = vpop.eup %1609 }
 0x47b   : > { %1615 = vrcp.f32 %v1346_v35  ;;  %v1349_v50 = vadd.f32 1.0, %v1610_v53 }
 0x47c   : > { %v1612_v15 = vpop.eup %1611 }
 0x47d   : > { %v1348_v51 = vadd.f32 1.0, %v1612_v15 }
 0x47f   : > { %1617 = vrcp.f32 %v1348_v51 }
 0x480   : > { %1619 = vrcp.f32 %v1349_v50 }
 0x486   : > { %v1614_v8 = vpop.eup %1613 }
 0x487   : > { %1365 = vperm.xlu0 %1567, %v1614_v8  }
 0x488   : > { %v1616_v52 = vpop.eup %1615 }
 0x489   : > { %1360 = vperm.xlu1 %1568, %v1616_v52  }
 0x48c   : > { %v1618_v55 = vpop.eup %1617 }
 0x48d   : > { %1370 = vperm.xlu1 %1568, %v1618_v55   ;;  %v1620_v63 = vpop.eup %1619 }
 0x491   : > { %1375 = vperm.xlu1 %1568, %v1620_v63  }
 0x502   : > { %v1366_v56 = vpop.permute.xlu0 %1365 }
 0x503   : > { %v1380_v54 = vmul.f32 %v1621_v58, %v1366_v56  ;;  %v1381_v48 = vmul.f32 %v1622_v37, %v1366_v56 }
 0x504   : > { %v1361_v39 = vpop.permute.xlu1 %1360 }
 0x505   : > { %1388 = vst [vmem:[%s366_s26 + $0x10] sm:$0xff] %v1380_v54  ;;  %1389 = vst [vmem:[%s366_s26 + $0x18] sm:$0xff] %v1381_v48  ;;  %v1378_v40 = vmul.f32 %v1623_v3, %v1361_v39  ;;  %v1379_v43 = vmul.f32 %v1624_v21, %v1361_v39 }
 0x507   : > { %1386 = vst [vmem:[%s366_s26] sm:$0xff] %v1378_v40  ;;  %1387 = vst [vmem:[%s366_s26 + $0x8] sm:$0xff] %v1379_v43 }
 0x508   : > { %v1371_v62 = vpop.permute.xlu1 %1370 }
 0x509   : > { %v1382_v24 = vmul.f32 %v1625_v61, %v1371_v62  ;;  %v1383_v26 = vmul.f32 %v1626_v16, %v1371_v62 }
 0x50b   : > { %1390 = vst [vmem:[%s366_s26 + $0x20] sm:$0xff] %v1382_v24  ;;  %1391 = vst [vmem:[%s366_s26 + $0x28] sm:$0xff] %v1383_v26 }
 0x50c   : > { %v1376_v60 = vpop.permute.xlu1 %1375 }
 0x50d   : > { %v1384_v1 = vmul.f32 %v1627_v27, %v1376_v60  ;;  %v1385_v59 = vmul.f32 %v1628_v17, %v1376_v60 }
 0x50f   : > { %1392 = vst [vmem:[%s366_s26 + $0x30] sm:$0xff] %v1384_v1  ;;  %1393 = vst [vmem:[%s366_s26 + $0x38] sm:$0xff] %v1385_v59 }
 0x510 PF: > { %s20_s13 = sadd.s32 1, %s1635_s13  }
 0x511   : > { %p17_p4 = scmp.ge.s32.totalorder %s20_s13, 6  }
 0x513   :  { %19 = sbr.rel (!%p17_p4) target bundleno = 1 (0x1), region = 90 }

</bundles_post_ra>
